<compile_context>
chip_gen: v5e
topology: v5e:2x2
jax: 0.10.0
libtpu: 0.0.40
codegen_flags: <defaults>
</compile_context>

<pallas_src>
import jax
import jax.numpy as jnp
from jax.experimental import pallas as pl
from jax.experimental.pallas import tpu as pltpu

STATE_DIM = 16
ACTION_DIM = 4
BATCH = 8
BN_EPS = 1e-5
HID2_LOGICAL = 456     # nn.Linear(512, 456) / BatchNorm1d(456)
HID2_PADDED = 512      # padded lane width used inside the kernel


def _bn_fused(h, gamma, beta, inv_b):
    """Training-mode BatchNorm1d with fused sum / sum-of-squares reduction."""
    s1 = jnp.sum(h, axis=0, keepdims=True)
    s2 = jnp.sum(h * h, axis=0, keepdims=True)
    mu = s1 * inv_b
    var = s2 * inv_b - mu * mu
    return (h - mu) * jax.lax.rsqrt(var + BN_EPS) * gamma + beta


def actor_kernel(
    x_ref,
    w1_ref, b1_ref,
    w2_ref, b2_ref, g2_ref, be2_ref,
    w3_ref, b3_ref,
    w4_ref, b4_ref,
    g4h_ref, be4h_ref, g4x_ref, be4x_ref,
    w5a_ref, w5b_ref, b5_ref,
    w6_ref, b6_ref,
    out_ref,
):
    x = x_ref[...]                       # (B, state_dim), f32
    inv_b = 1.0 / x.shape[0]             # static at trace time

    def dot(a, w_ref):
        # bf16 weights are up-cast in VMEM; f32 accumulate on the MXU.
        return jnp.dot(a, w_ref[...].astype(jnp.float32),
                       preferred_element_type=jnp.float32)

    # l1 + relu
    h = jnp.maximum(dot(x, w1_ref) + b1_ref[...], 0.0)

    # l2 (padded 456 -> 512: extra columns are exactly zero)
    h = dot(h, w2_ref) + b2_ref[...]

    # bn_2 + relu  (padded columns normalize to exactly 0)
    h = jnp.maximum(_bn_fused(h, g2_ref[...], be2_ref[...], inv_b), 0.0)

    # l3_1 + relu  (padded w3 rows are zero -> no contribution)
    h = jnp.maximum(dot(h, w3_ref) + b3_ref[...], 0.0)

    # l4_1 + relu
    h4 = jnp.maximum(dot(h, w4_ref) + b4_ref[...], 0.0)

    # cat((h4, x)) -> bn_4 -> l5_1, rewritten without the lane-axis concat:
    # BN is per-column, so bn(concat) == (bn(h4), bn(x)); the following matmul
    # over the concat equals the sum of two split matmuls.
    h4n = _bn_fused(h4, g4h_ref[...], be4h_ref[...], inv_b)
    xn = _bn_fused(x, g4x_ref[...], be4x_ref[...], inv_b)
    h = dot(h4n, w5a_ref) + dot(xn, w5b_ref) + b5_ref[...]
    h = jnp.maximum(h, 0.0)

    # l6_1 + tanh
    out_ref[...] = jnp.tanh(dot(h, w6_ref) + b6_ref[...])


def init_params(key, state_dim, action_dim):
    """Deterministic synthetic init. Weights bf16 (for DMA), biases/BN f32."""
    dims = [
        (state_dim, 512),            # l1
        (512, HID2_LOGICAL),         # l2
        (HID2_LOGICAL, 128),         # l3_1
        (128, 64),                   # l4_1
        (64 + state_dim, 32),        # l5_1
        (32, action_dim),            # l6_1
    ]
    params = {}
    keys = jax.random.split(key, 2 * len(dims) + 2)
    for i, (fin, fout) in enumerate(dims):
        bound = 1.0 / jnp.sqrt(jnp.float32(fin))
        w = jax.random.uniform(keys[2 * i], (fin, fout), jnp.float32, -bound, bound)
        b = jax.random.uniform(keys[2 * i + 1], (1, fout), jnp.float32, -bound, bound)
        params[f"w{i + 1}"] = w.astype(jnp.bfloat16)     # bf16 weights in HBM
        params[f"b{i + 1}"] = b                          # f32 biases
    # BatchNorm affine params (gamma≈1 with tiny jitter, beta=0)
    params["g2"] = (jnp.ones((1, HID2_LOGICAL), jnp.float32)
                    + 0.01 * jax.random.normal(keys[-2], (1, HID2_LOGICAL)))
    params["be2"] = jnp.zeros((1, HID2_LOGICAL), jnp.float32)
    params["g4"] = (jnp.ones((1, 64 + state_dim), jnp.float32)
                    + 0.01 * jax.random.normal(keys[-1], (1, 64 + state_dim)))
    params["be4"] = jnp.zeros((1, 64 + state_dim), jnp.float32)
    return params


def pack_kernel_params(params, state_dim):
    """Pad the 456-wide layer to 512 and split bn_4 / l5_1 for the kernel."""
    pad_c = HID2_PADDED - HID2_LOGICAL
    kp = {
        "w1": params["w1"], "b1": params["b1"],
        # l2 / bn_2 padded with zeros along the 456 axis (exact, zero extra info)
        "w2": jnp.pad(params["w2"], ((0, 0), (0, pad_c))),
        "b2": jnp.pad(params["b2"], ((0, 0), (0, pad_c))),
        "g2": jnp.pad(params["g2"], ((0, 0), (0, pad_c))),
        "be2": jnp.pad(params["be2"], ((0, 0), (0, pad_c))),
        # l3_1: zero-pad the input rows to match the padded activation
        "w3": jnp.pad(params["w3"], ((0, pad_c), (0, 0))),
        "b3": params["b3"],
        "w4": params["w4"], "b4": params["b4"],
        # bn_4 split into the h4 (64) part and the x (state_dim) part
        "g4h": params["g4"][:, :64], "be4h": params["be4"][:, :64],
        "g4x": params["g4"][:, 64:], "be4x": params["be4"][:, 64:],
        # l5_1 split to match (concat matmul == sum of split matmuls)
        "w5a": params["w5"][:64, :], "w5b": params["w5"][64:, :],
        "b5": params["b5"],
        "w6": params["w6"], "b6": params["b6"],
    }
    return kp


@jax.jit
def actor_forward(x, kp):
    batch = x.shape[0]
    action_dim = kp["w6"].shape[1]
    args = (
        x,
        kp["w1"], kp["b1"],
        kp["w2"], kp["b2"], kp["g2"], kp["be2"],
        kp["w3"], kp["b3"],
        kp["w4"], kp["b4"],
        kp["g4h"], kp["be4h"], kp["g4x"], kp["be4x"],
        kp["w5a"], kp["w5b"], kp["b5"],
        kp["w6"], kp["b6"],
    )
    vmem = pl.BlockSpec(memory_space=pltpu.MemorySpace.VMEM)
    return pl.pallas_call(
        actor_kernel,
        out_shape=jax.ShapeDtypeStruct((batch, action_dim), jnp.float32),
        in_specs=[vmem] * len(args),
        out_specs=vmem,
    )(*args)


def actor_forward_ref(x, params):
    """Pure-JAX reference: original (unpadded, concat-based) formulation."""
    hp = jax.lax.Precision.HIGHEST

    def dot(a, w):
        return jnp.dot(a, w.astype(jnp.float32), precision=hp)

    def bn(h, g, b):
        mu = jnp.mean(h, axis=0, keepdims=True)
        var = jnp.mean((h - mu) ** 2, axis=0, keepdims=True)
        return (h - mu) / jnp.sqrt(var + BN_EPS) * g + b

    h = jax.nn.relu(dot(x, params["w1"]) + params["b1"])
    h = dot(h, params["w2"]) + params["b2"]
    h = jax.nn.relu(bn(h, params["g2"], params["be2"]))
    h = jax.nn.relu(dot(h, params["w3"]) + params["b3"])
    h = jax.nn.relu(dot(h, params["w4"]) + params["b4"])
    h = jnp.concatenate([h, x], axis=1)
    h = bn(h, params["g4"], params["be4"])
    h = jax.nn.relu(dot(h, params["w5"]) + params["b5"])
    return jnp.tanh(dot(h, params["w6"]) + params["b6"])


if __name__ == "__main__":
    key = jax.random.PRNGKey(0)
    k_param, k_x = jax.random.split(key)
    params = init_params(k_param, STATE_DIM, ACTION_DIM)
    kparams = pack_kernel_params(params, STATE_DIM)
    x = jax.random.normal(k_x, (BATCH, STATE_DIM), jnp.float32)

    out = actor_forward(x, kparams)
    out = jax.block_until_ready(out)

    ref = actor_forward_ref(x, params)
    assert out.shape == (BATCH, ACTION_DIM)
    max_err = float(jnp.max(jnp.abs(out - ref)))
    assert jnp.allclose(out, ref, atol=2e-3, rtol=2e-3), f"mismatch vs reference (max err {max_err})"
    print("KERNEL_OK")
</pallas_src>

<mosaic_0001>
module attributes {stable_mosaic.version = 11 : i64} {
  func.func @actor_kernel(%arg0: memref<8x16xf32, #tpu.memory_space<vmem>>, %arg1: memref<16x512xbf16, #tpu.memory_space<vmem>>, %arg2: memref<1x512xf32, #tpu.memory_space<vmem>>, %arg3: memref<512x512xbf16, #tpu.memory_space<vmem>>, %arg4: memref<1x512xf32, #tpu.memory_space<vmem>>, %arg5: memref<1x512xf32, #tpu.memory_space<vmem>>, %arg6: memref<1x512xf32, #tpu.memory_space<vmem>>, %arg7: memref<512x128xbf16, #tpu.memory_space<vmem>>, %arg8: memref<1x128xf32, #tpu.memory_space<vmem>>, %arg9: memref<128x64xbf16, #tpu.memory_space<vmem>>, %arg10: memref<1x64xf32, #tpu.memory_space<vmem>>, %arg11: memref<1x64xf32, #tpu.memory_space<vmem>>, %arg12: memref<1x64xf32, #tpu.memory_space<vmem>>, %arg13: memref<1x16xf32, #tpu.memory_space<vmem>>, %arg14: memref<1x16xf32, #tpu.memory_space<vmem>>, %arg15: memref<64x32xbf16, #tpu.memory_space<vmem>>, %arg16: memref<16x32xbf16, #tpu.memory_space<vmem>>, %arg17: memref<1x32xf32, #tpu.memory_space<vmem>>, %arg18: memref<32x4xbf16, #tpu.memory_space<vmem>>, %arg19: memref<1x4xf32, #tpu.memory_space<vmem>>, %arg20: memref<8x4xf32, #tpu.memory_space<vmem>>) attributes {dimension_semantics = [], scalar_prefetch = 0 : i64, scratch_operands = 0 : i64, tpu.core_type = #tpu.core_type<tc>} {
    %c0 = arith.constant 0 : index
    %c0_0 = arith.constant 0 : index
    %0 = vector.load %arg0[%c0, %c0_0] : memref<8x16xf32, #tpu.memory_space<vmem>>, vector<8x16xf32>
    %c0_1 = arith.constant 0 : index
    %c0_2 = arith.constant 0 : index
    %1 = vector.load %arg1[%c0_1, %c0_2] : memref<16x512xbf16, #tpu.memory_space<vmem>>, vector<16x512xbf16>
    %2 = arith.extf %1 : vector<16x512xbf16> to vector<16x512xf32>
    %cst = arith.constant dense<0.000000e+00> : vector<8x512xf32>
    %3 = tpu.matmul %0, %2, %cst {dimension_numbers = #tpu.dot_dimension_numbers<[1], [0], [0], [1], [0, 0, 1, 1], [], []>} : vector<8x16xf32>, vector<16x512xf32>, vector<8x512xf32> -> vector<8x512xf32>
    %c0_3 = arith.constant 0 : index
    %c0_4 = arith.constant 0 : index
    %4 = vector.load %arg2[%c0_3, %c0_4] : memref<1x512xf32, #tpu.memory_space<vmem>>, vector<1x512xf32>
    %5 = vector.broadcast %4 : vector<1x512xf32> to vector<8x512xf32>
    %6 = arith.addf %3, %5 : vector<8x512xf32>
    %cst_5 = arith.constant 0.000000e+00 : f32
    %7 = vector.broadcast %cst_5 : f32 to vector<8x512xf32>
    %8 = arith.maximumf %6, %7 : vector<8x512xf32>
    %c0_6 = arith.constant 0 : index
    %c0_7 = arith.constant 0 : index
    %9 = vector.load %arg3[%c0_6, %c0_7] : memref<512x512xbf16, #tpu.memory_space<vmem>>, vector<512x512xbf16>
    %10 = arith.extf %9 : vector<512x512xbf16> to vector<512x512xf32>
    %cst_8 = arith.constant dense<0.000000e+00> : vector<8x512xf32>
    %11 = tpu.matmul %8, %10, %cst_8 {dimension_numbers = #tpu.dot_dimension_numbers<[1], [0], [0], [1], [0, 0, 1, 1], [], []>} : vector<8x512xf32>, vector<512x512xf32>, vector<8x512xf32> -> vector<8x512xf32>
    %c0_9 = arith.constant 0 : index
    %c0_10 = arith.constant 0 : index
    %12 = vector.load %arg4[%c0_9, %c0_10] : memref<1x512xf32, #tpu.memory_space<vmem>>, vector<1x512xf32>
    %13 = vector.broadcast %12 : vector<1x512xf32> to vector<8x512xf32>
    %14 = arith.addf %11, %13 : vector<8x512xf32>
    %c0_11 = arith.constant 0 : index
    %c0_12 = arith.constant 0 : index
    %15 = vector.load %arg5[%c0_11, %c0_12] : memref<1x512xf32, #tpu.memory_space<vmem>>, vector<1x512xf32>
    %c0_13 = arith.constant 0 : index
    %c0_14 = arith.constant 0 : index
    %16 = vector.load %arg6[%c0_13, %c0_14] : memref<1x512xf32, #tpu.memory_space<vmem>>, vector<1x512xf32>
    %cst_15 = arith.constant dense<0.000000e+00> : vector<512xf32>
    %17 = vector.multi_reduction <add>, %14, %cst_15 [0] : vector<8x512xf32> to vector<512xf32>
    %18 = vector.shape_cast %17 : vector<512xf32> to vector<1x512xf32>
    %19 = arith.mulf %14, %14 : vector<8x512xf32>
    %cst_16 = arith.constant dense<0.000000e+00> : vector<512xf32>
    %20 = vector.multi_reduction <add>, %19, %cst_16 [0] : vector<8x512xf32> to vector<512xf32>
    %21 = vector.shape_cast %20 : vector<512xf32> to vector<1x512xf32>
    %cst_17 = arith.constant 1.250000e-01 : f32
    %22 = vector.broadcast %cst_17 : f32 to vector<1x512xf32>
    %23 = arith.mulf %18, %22 : vector<1x512xf32>
    %cst_18 = arith.constant 1.250000e-01 : f32
    %24 = vector.broadcast %cst_18 : f32 to vector<1x512xf32>
    %25 = arith.mulf %21, %24 : vector<1x512xf32>
    %26 = arith.mulf %23, %23 : vector<1x512xf32>
    %27 = arith.subf %25, %26 : vector<1x512xf32>
    %28 = vector.broadcast %23 : vector<1x512xf32> to vector<8x512xf32>
    %29 = arith.subf %14, %28 : vector<8x512xf32>
    %cst_19 = arith.constant 9.99999974E-6 : f32
    %30 = vector.broadcast %cst_19 : f32 to vector<1x512xf32>
    %31 = arith.addf %27, %30 : vector<1x512xf32>
    %32 = math.rsqrt %31 : vector<1x512xf32>
    %33 = vector.broadcast %32 : vector<1x512xf32> to vector<8x512xf32>
    %34 = arith.mulf %29, %33 : vector<8x512xf32>
    %35 = vector.broadcast %15 : vector<1x512xf32> to vector<8x512xf32>
    %36 = arith.mulf %34, %35 : vector<8x512xf32>
    %37 = vector.broadcast %16 : vector<1x512xf32> to vector<8x512xf32>
    %38 = arith.addf %36, %37 : vector<8x512xf32>
    %cst_20 = arith.constant 0.000000e+00 : f32
    %39 = vector.broadcast %cst_20 : f32 to vector<8x512xf32>
    %40 = arith.maximumf %38, %39 : vector<8x512xf32>
    %c0_21 = arith.constant 0 : index
    %c0_22 = arith.constant 0 : index
    %41 = vector.load %arg7[%c0_21, %c0_22] : memref<512x128xbf16, #tpu.memory_space<vmem>>, vector<512x128xbf16>
    %42 = arith.extf %41 : vector<512x128xbf16> to vector<512x128xf32>
    %cst_23 = arith.constant dense<0.000000e+00> : vector<8x128xf32>
    %43 = tpu.matmul %40, %42, %cst_23 {dimension_numbers = #tpu.dot_dimension_numbers<[1], [0], [0], [1], [0, 0, 1, 1], [], []>} : vector<8x512xf32>, vector<512x128xf32>, vector<8x128xf32> -> vector<8x128xf32>
    %c0_24 = arith.constant 0 : index
    %c0_25 = arith.constant 0 : index
    %44 = vector.load %arg8[%c0_24, %c0_25] : memref<1x128xf32, #tpu.memory_space<vmem>>, vector<1x128xf32>
    %45 = vector.broadcast %44 : vector<1x128xf32> to vector<8x128xf32>
    %46 = arith.addf %43, %45 : vector<8x128xf32>
    %cst_26 = arith.constant 0.000000e+00 : f32
    %47 = vector.broadcast %cst_26 : f32 to vector<8x128xf32>
    %48 = arith.maximumf %46, %47 : vector<8x128xf32>
    %c0_27 = arith.constant 0 : index
    %c0_28 = arith.constant 0 : index
    %49 = vector.load %arg9[%c0_27, %c0_28] : memref<128x64xbf16, #tpu.memory_space<vmem>>, vector<128x64xbf16>
    %50 = arith.extf %49 : vector<128x64xbf16> to vector<128x64xf32>
    %cst_29 = arith.constant dense<0.000000e+00> : vector<8x64xf32>
    %51 = tpu.matmul %48, %50, %cst_29 {dimension_numbers = #tpu.dot_dimension_numbers<[1], [0], [0], [1], [0, 0, 1, 1], [], []>} : vector<8x128xf32>, vector<128x64xf32>, vector<8x64xf32> -> vector<8x64xf32>
    %c0_30 = arith.constant 0 : index
    %c0_31 = arith.constant 0 : index
    %52 = vector.load %arg10[%c0_30, %c0_31] : memref<1x64xf32, #tpu.memory_space<vmem>>, vector<1x64xf32>
    %53 = vector.broadcast %52 : vector<1x64xf32> to vector<8x64xf32>
    %54 = arith.addf %51, %53 : vector<8x64xf32>
    %cst_32 = arith.constant 0.000000e+00 : f32
    %55 = vector.broadcast %cst_32 : f32 to vector<8x64xf32>
    %56 = arith.maximumf %54, %55 : vector<8x64xf32>
    %c0_33 = arith.constant 0 : index
    %c0_34 = arith.constant 0 : index
    %57 = vector.load %arg11[%c0_33, %c0_34] : memref<1x64xf32, #tpu.memory_space<vmem>>, vector<1x64xf32>
    %c0_35 = arith.constant 0 : index
    %c0_36 = arith.constant 0 : index
    %58 = vector.load %arg12[%c0_35, %c0_36] : memref<1x64xf32, #tpu.memory_space<vmem>>, vector<1x64xf32>
    %cst_37 = arith.constant dense<0.000000e+00> : vector<64xf32>
    %59 = vector.multi_reduction <add>, %56, %cst_37 [0] : vector<8x64xf32> to vector<64xf32>
    %60 = vector.shape_cast %59 : vector<64xf32> to vector<1x64xf32>
    %61 = arith.mulf %56, %56 : vector<8x64xf32>
    %cst_38 = arith.constant dense<0.000000e+00> : vector<64xf32>
    %62 = vector.multi_reduction <add>, %61, %cst_38 [0] : vector<8x64xf32> to vector<64xf32>
    %63 = vector.shape_cast %62 : vector<64xf32> to vector<1x64xf32>
    %cst_39 = arith.constant 1.250000e-01 : f32
    %64 = vector.broadcast %cst_39 : f32 to vector<1x64xf32>
    %65 = arith.mulf %60, %64 : vector<1x64xf32>
    %cst_40 = arith.constant 1.250000e-01 : f32
    %66 = vector.broadcast %cst_40 : f32 to vector<1x64xf32>
    %67 = arith.mulf %63, %66 : vector<1x64xf32>
    %68 = arith.mulf %65, %65 : vector<1x64xf32>
    %69 = arith.subf %67, %68 : vector<1x64xf32>
    %70 = vector.broadcast %65 : vector<1x64xf32> to vector<8x64xf32>
    %71 = arith.subf %56, %70 : vector<8x64xf32>
    %cst_41 = arith.constant 9.99999974E-6 : f32
    %72 = vector.broadcast %cst_41 : f32 to vector<1x64xf32>
    %73 = arith.addf %69, %72 : vector<1x64xf32>
    %74 = math.rsqrt %73 : vector<1x64xf32>
    %75 = vector.broadcast %74 : vector<1x64xf32> to vector<8x64xf32>
    %76 = arith.mulf %71, %75 : vector<8x64xf32>
    %77 = vector.broadcast %57 : vector<1x64xf32> to vector<8x64xf32>
    %78 = arith.mulf %76, %77 : vector<8x64xf32>
    %79 = vector.broadcast %58 : vector<1x64xf32> to vector<8x64xf32>
    %80 = arith.addf %78, %79 : vector<8x64xf32>
    %c0_42 = arith.constant 0 : index
    %c0_43 = arith.constant 0 : index
    %81 = vector.load %arg13[%c0_42, %c0_43] : memref<1x16xf32, #tpu.memory_space<vmem>>, vector<1x16xf32>
    %c0_44 = arith.constant 0 : index
    %c0_45 = arith.constant 0 : index
    %82 = vector.load %arg14[%c0_44, %c0_45] : memref<1x16xf32, #tpu.memory_space<vmem>>, vector<1x16xf32>
    %cst_46 = arith.constant dense<0.000000e+00> : vector<16xf32>
    %83 = vector.multi_reduction <add>, %0, %cst_46 [0] : vector<8x16xf32> to vector<16xf32>
    %84 = vector.shape_cast %83 : vector<16xf32> to vector<1x16xf32>
    %85 = arith.mulf %0, %0 : vector<8x16xf32>
    %cst_47 = arith.constant dense<0.000000e+00> : vector<16xf32>
    %86 = vector.multi_reduction <add>, %85, %cst_47 [0] : vector<8x16xf32> to vector<16xf32>
    %87 = vector.shape_cast %86 : vector<16xf32> to vector<1x16xf32>
    %cst_48 = arith.constant 1.250000e-01 : f32
    %88 = vector.broadcast %cst_48 : f32 to vector<1x16xf32>
    %89 = arith.mulf %84, %88 : vector<1x16xf32>
    %cst_49 = arith.constant 1.250000e-01 : f32
    %90 = vector.broadcast %cst_49 : f32 to vector<1x16xf32>
    %91 = arith.mulf %87, %90 : vector<1x16xf32>
    %92 = arith.mulf %89, %89 : vector<1x16xf32>
    %93 = arith.subf %91, %92 : vector<1x16xf32>
    %94 = vector.broadcast %89 : vector<1x16xf32> to vector<8x16xf32>
    %95 = arith.subf %0, %94 : vector<8x16xf32>
    %cst_50 = arith.constant 9.99999974E-6 : f32
    %96 = vector.broadcast %cst_50 : f32 to vector<1x16xf32>
    %97 = arith.addf %93, %96 : vector<1x16xf32>
    %98 = math.rsqrt %97 : vector<1x16xf32>
    %99 = vector.broadcast %98 : vector<1x16xf32> to vector<8x16xf32>
    %100 = arith.mulf %95, %99 : vector<8x16xf32>
    %101 = vector.broadcast %81 : vector<1x16xf32> to vector<8x16xf32>
    %102 = arith.mulf %100, %101 : vector<8x16xf32>
    %103 = vector.broadcast %82 : vector<1x16xf32> to vector<8x16xf32>
    %104 = arith.addf %102, %103 : vector<8x16xf32>
    %c0_51 = arith.constant 0 : index
    %c0_52 = arith.constant 0 : index
    %105 = vector.load %arg15[%c0_51, %c0_52] : memref<64x32xbf16, #tpu.memory_space<vmem>>, vector<64x32xbf16>
    %106 = arith.extf %105 : vector<64x32xbf16> to vector<64x32xf32>
    %cst_53 = arith.constant dense<0.000000e+00> : vector<8x32xf32>
    %107 = tpu.matmul %80, %106, %cst_53 {dimension_numbers = #tpu.dot_dimension_numbers<[1], [0], [0], [1], [0, 0, 1, 1], [], []>} : vector<8x64xf32>, vector<64x32xf32>, vector<8x32xf32> -> vector<8x32xf32>
    %c0_54 = arith.constant 0 : index
    %c0_55 = arith.constant 0 : index
    %108 = vector.load %arg16[%c0_54, %c0_55] : memref<16x32xbf16, #tpu.memory_space<vmem>>, vector<16x32xbf16>
    %109 = arith.extf %108 : vector<16x32xbf16> to vector<16x32xf32>
    %cst_56 = arith.constant dense<0.000000e+00> : vector<8x32xf32>
    %110 = tpu.matmul %104, %109, %cst_56 {dimension_numbers = #tpu.dot_dimension_numbers<[1], [0], [0], [1], [0, 0, 1, 1], [], []>} : vector<8x16xf32>, vector<16x32xf32>, vector<8x32xf32> -> vector<8x32xf32>
    %111 = arith.addf %107, %110 : vector<8x32xf32>
    %c0_57 = arith.constant 0 : index
    %c0_58 = arith.constant 0 : index
    %112 = vector.load %arg17[%c0_57, %c0_58] : memref<1x32xf32, #tpu.memory_space<vmem>>, vector<1x32xf32>
    %113 = vector.broadcast %112 : vector<1x32xf32> to vector<8x32xf32>
    %114 = arith.addf %111, %113 : vector<8x32xf32>
    %cst_59 = arith.constant 0.000000e+00 : f32
    %115 = vector.broadcast %cst_59 : f32 to vector<8x32xf32>
    %116 = arith.maximumf %114, %115 : vector<8x32xf32>
    %c0_60 = arith.constant 0 : index
    %c0_61 = arith.constant 0 : index
    %117 = vector.load %arg18[%c0_60, %c0_61] : memref<32x4xbf16, #tpu.memory_space<vmem>>, vector<32x4xbf16>
    %118 = arith.extf %117 : vector<32x4xbf16> to vector<32x4xf32>
    %cst_62 = arith.constant dense<0.000000e+00> : vector<8x4xf32>
    %119 = tpu.matmul %116, %118, %cst_62 {dimension_numbers = #tpu.dot_dimension_numbers<[1], [0], [0], [1], [0, 0, 1, 1], [], []>} : vector<8x32xf32>, vector<32x4xf32>, vector<8x4xf32> -> vector<8x4xf32>
    %c0_63 = arith.constant 0 : index
    %c0_64 = arith.constant 0 : index
    %120 = vector.load %arg19[%c0_63, %c0_64] : memref<1x4xf32, #tpu.memory_space<vmem>>, vector<1x4xf32>
    %121 = vector.broadcast %120 : vector<1x4xf32> to vector<8x4xf32>
    %122 = arith.addf %119, %121 : vector<8x4xf32>
    %123 = math.tanh %122 : vector<8x4xf32>
    %c0_65 = arith.constant 0 : index
    %c0_66 = arith.constant 0 : index
    %124 = vector.load %arg20[%c0_65, %c0_66] : memref<8x4xf32, #tpu.memory_space<vmem>>, vector<8x4xf32>
    tpu.vector_store %arg20[%c0_65, %c0_66], %123 {strides = array<i32>} : memref<8x4xf32, #tpu.memory_space<vmem>>, vector<8x4xf32>,
    return
  }
}

</mosaic_0001>

<bundles_post_ra>
// kernel: actor_forward.1
= control target key start
LH: loop header
LB: loop body
LE: loop exit
PB: predicated region body
PF: predicated region fallthrough
CT: control target
= control target key end

     0   :  { %s2718_s0 = inlined_call_operand.vmem [shape: f32[8,16], index: 0, kind: input, shape index: {}]   ;;  %s2719_s1 = inlined_call_operand.vmem [shape: bf16[16,512], index: 1, kind: input, shape index: {}]   ;;  %s2720_s2 = inlined_call_operand.vmem [shape: f32[1,512], index: 2, kind: input, shape index: {}]   ;;  %s2721_s3 = inlined_call_operand.hbm [shape: bf16[512,512], index: 3, kind: input, shape index: {}]   ;;  %s2722_s4 = inlined_call_operand.vmem [shape: f32[1,512], index: 4, kind: input, shape index: {}]   ;;  %s2723_s5 = inlined_call_operand.vmem [shape: f32[1,512], index: 5, kind: input, shape index: {}]   ;;  %s2724_s6 = inlined_call_operand.vmem [shape: f32[1,512], index: 6, kind: input, shape index: {}]   ;;  %s2725_s7 = inlined_call_operand.hbm [shape: bf16[512,128], index: 7, kind: input, shape index: {}]   ;;  %s2726_s8 = inlined_call_operand.vmem [shape: f32[1,128], index: 8, kind: input, shape index: {}]   ;;  %s2727_s9 = inlined_call_operand.vmem [shape: bf16[128,64], index: 9, kind: input, shape index: {}]   ;;  %s2728_s10 = inlined_call_operand.vmem [shape: f32[1,64], index: 10, kind: input, shape index: {}]   ;;  %s2729_s11 = inlined_call_operand.vmem [shape: f32[1,64], index: 11, kind: input, shape index: {}]   ;;  %s2730_s12 = inlined_call_operand.vmem [shape: f32[1,64], index: 12, kind: input, shape index: {}]   ;;  %s2731_s13 = inlined_call_operand.vmem [shape: f32[1,16], index: 13, kind: input, shape index: {}]   ;;  %s2732_s14 = inlined_call_operand.vmem [shape: f32[1,16], index: 14, kind: input, shape index: {}]   ;;  %s2733_s15 = inlined_call_operand.vmem [shape: bf16[64,32], index: 15, kind: input, shape index: {}]   ;;  %s2734_s16 = inlined_call_operand.vmem [shape: bf16[16,32], index: 16, kind: input, shape index: {}]   ;;  %s2735_s17 = inlined_call_operand.vmem [shape: f32[1,32], index: 17, kind: input, shape index: {}]   ;;  %s2736_s18 = inlined_call_operand.vmem [shape: bf16[32,4], index: 18, kind: input, shape index: {}]   ;;  %s2737_s19 = inlined_call_operand.vmem [shape: f32[1,4], index: 19, kind: input, shape index: {}]   ;;  %s2738_s20 = inlined_call_operand.vmem [shape: f32[8,4], index: 20, kind: output, shape index: {}]  }
   0x1   :  { %2770 = sst [smem:[#allocation23_spill]] %s2718_s0 }
   0x2   :  { %2771 = sst [smem:[#allocation24_spill]] %s2719_s1 }
   0x3   :  { %2772 = sst [smem:[#allocation25_spill]] %s2720_s2 }
   0x4   :  { %2773 = sst [smem:[#allocation26_spill]] %s2721_s3 }
   0x5   :  { %2774 = sst [smem:[#allocation27_spill]] %s2722_s4 }
   0x6   :  { %25 = vsyncpa [#allocation3], 0  ;;  %s2775_s23 = sld [smem:[#allocation26_spill]] }
   0xc   :  { %s37_s24 = sshll.u32 %s2775_s23, 4  ;;  %s38_s24 = int_to_ptr.hbm [resolvable:$true] %s37_s24 }
   0xd   :  { %26 = vsyncpa [#allocation5], 0  ;;  %s1864_s2 = smov [#allocation2]   ;;  %s56_s27 = sshll.u32 %s2725_s7, 4  ;;  %s57_s27 = int_to_ptr.hbm [resolvable:$true] %s56_s27 }
   0xe   :  { %s39_s25 = sshll.u32 %s1864_s2, 4  ;;  %s1865_s28 = smov 256   ;;  %s40_s25 = int_to_ptr.vmem [resolvable:$true] %s39_s25 }
   0xf   :  { %s1866_s4 = smov 16   ;;  %s1867_s29 = smov [#allocation4]  }
  0x10   :  { %45 = dma.hbm_to_vmem [thread:$0]  %s38_s24, 16384, %s40_s25, [#allocation3], %s1865_s28, %s1865_s28, %s1866_s4  }
  0x11   :  { %s58_s30 = sshll.u32 %s1867_s29, 4  ;;  %s1868_s0 = smov 64   ;;  %s59_s30 = int_to_ptr.vmem [resolvable:$true] %s58_s30 }
  0x12   :  { %s1869_s21 = smov 4  }
  0x13   :  { %64 = dma.hbm_to_vmem [thread:$0]  %s57_s27, 4096, %s59_s30, [#allocation5], %s1868_s0, %s1868_s0, %s1869_s21  }
  0x14   :  { %1860 = dma.done.wait [#allocation3], 16384  }
  0x15   :  { %1861 = vsyncadd [#allocation3], 4294950912 }
  0x16   :  { %1862 = dma.done.wait [#allocation5], 4096  }
  0x17   :  { %1863 = vsyncadd [#allocation5], 4294963200  ;;  %s2776_s23 = sld [smem:[#allocation24_spill]]  ;;  %v1993_v8 = vld [vmem:[#allocation2 + $0xf0] sm:$0xff]  ;;  %vm120_vm0 = vcmask 130048   ;;  %v2000_v12 = vld [vmem:[#allocation2 + $0xe0] sm:$0xff] }
  0x18   :  { %s2777_s4 = sld [smem:[#allocation23_spill]]  ;;  %v2002_v13 = vld [vmem:[#allocation2 + $0x2f0] sm:$0xff]  ;;  %v396_v16 = vunpack.c.l.bf16 %v1993_v8  ;;  %v2009_v18 = vld [vmem:[#allocation2 + $0x2e0] sm:$0xff]  ;;  %v392_v24 = vunpack.c.l.bf16 %v2000_v12  ;;  %vm1346_vm13 = vcmask 523264  }
  0x19   :  { %v2004_v14 = vld [vmem:[#allocation2 + $0x3f0] sm:$0xff]  ;;  %v524_v20 = vunpack.c.l.bf16 %v2002_v13  ;;  %v2015_v22 = vld [vmem:[#allocation2 + $0x3e0] sm:$0xff]  ;;  %v520_v29 = vunpack.c.l.bf16 %v2009_v18  ;;  %s2806_s0 = sld [smem:[#allocation25_spill]] }
  0x1a   :  { %v2007_v17 = vld [vmem:[#allocation2 + $0x1f0] sm:$0xff]  ;;  %v588_v21 = vunpack.c.l.bf16 %v2004_v14  ;;  %v2020_v25 = vld [vmem:[#allocation2 + $0x1e0] sm:$0xff]  ;;  %602 = vmatpush.msra.mxu0 %v396_v16  ;;  %v584_v31 = vunpack.c.l.bf16 %v2015_v22  ;;  %s2837_s22 = sld [smem:[#allocation27_spill]] }
  0x1b   :  { %v2011_v19 = vld [vmem:[#allocation2 + $0xd0] sm:$0xff]  ;;  %v2028_v27 = vld [vmem:[#allocation2 + $0xc0] sm:$0xff]  ;;  %v460_v28 = vunpack.c.l.bf16 %v2007_v17  ;;  %v456_v35 = vunpack.c.l.bf16 %v2020_v25 }
  0x1c   :  { %v2022_v26 = vld [vmem:[#allocation2 + $0x2d0] sm:$0xff]  ;;  %v388_v30 = vunpack.c.l.bf16 %v2011_v19  ;;  %v2042_v37 = vld [vmem:[#allocation2 + $0x2c0] sm:$0xff]  ;;  %603 = vmatpush.msra.mxu0 %v392_v24  ;;  %v384_v38 = vunpack.c.l.bf16 %v2028_v27 }
  0x1d   :  { %v100_v0 = vld [vmem:[%s2776_s23 + $0x10] sm:$0xff]  ;;  %v101_v1 = vld [vmem:[%s2776_s23 + $0x18] sm:$0xff]  ;;  %v98_v2 = vld [vmem:[%s2776_s23] sm:$0xff]  ;;  %v516_v36 = vunpack.c.l.bf16 %v2022_v26  ;;  %v512_v46 = vunpack.c.l.bf16 %v2042_v37 }
  0x1e   :  { %v106_v3 = vunpack.c.l.bf16 %v100_v0  ;;  %v108_v4 = vunpack.c.l.bf16 %v101_v1  ;;  %v109_v5 = vunpack.c.h.bf16 %v101_v1  ;;  %v102_v6 = vunpack.c.l.bf16 %v98_v2  ;;  %v99_v7 = vld [vmem:[%s2776_s23 + $0x8] sm:$0xff]  ;;  %v1998_v11 = vld [vmem:[%s2777_s4] sm:$0xff]  ;;  %v2034_v32 = vld [vmem:[#allocation2 + $0x3d0] sm:$0xff]  ;;  %604 = vmatpush.msra.mxu0 %v388_v30 }
  0x1f   :  { %v104_v9 = vunpack.c.l.bf16 %v99_v7  ;;  %v105_v10 = vunpack.c.h.bf16 %v99_v7  ;;  %v107_v15 = vunpack.c.h.bf16 %v100_v0  ;;  %v103_v23 = vunpack.c.h.bf16 %v98_v2  ;;  %v2036_v33 = vld [vmem:[#allocation2 + $0x1d0] sm:$0xff]  ;;  %v2045_v39 = vld [vmem:[#allocation2 + $0x3c0] sm:$0xff] }
  0x20   :  { %138 = vmatpush.msra.mxu1 %v106_v3  ;;  %178 = vmatpush.msra.mxu2 %v108_v4  ;;  %v2038_v34 = vld [vmem:[#allocation2 + $0xb0] sm:$0xff]  ;;  %v2047_v40 = vld [vmem:[#allocation2 + $0x1c0] sm:$0xff]  ;;  %v580_v42 = vunpack.c.l.bf16 %v2034_v32  ;;  %v452_v43 = vunpack.c.l.bf16 %v2036_v33  ;;  %v576_v50 = vunpack.c.l.bf16 %v2045_v39 }
  0x21   :  { %198 = vmatpush.msra.mxu3 %v109_v5  ;;  %v2049_v41 = vld [vmem:[#allocation2 + $0xa0] sm:$0xff]  ;;  %v2053_v44 = vld [vmem:[#allocation2 + $0x2b0] sm:$0xff]  ;;  %v380_v45 = vunpack.c.l.bf16 %v2038_v34  ;;  %v448_v51 = vunpack.c.l.bf16 %v2047_v40  ;;  %605 = vmatpush.msra.mxu0 %v384_v38 }
  0x22   :  { %139 = vmatpush.msra.mxu1 %v102_v6  ;;  %179 = vmatpush.msra.mxu2 %v104_v9  ;;  %v2057_v47 = vld [vmem:[#allocation2 + $0x3b0] sm:$0xff]  ;;  %v2065_v52 = vld [vmem:[#allocation2 + $0x2a0] sm:$0xff]  ;;  %v376_v53 = vunpack.c.l.bf16 %v2049_v41  ;;  %v508_v54 = vunpack.c.l.bf16 %v2053_v44 }
  0x23   :  { %199 = vmatpush.msra.mxu3 %v105_v10  ;;  %1546 = vmatmul.msk.f32.vlgmr.msra.gmra.mxu1 %vm120_vm0, %v1998_v11  ;;  %v2059_v48 = vld [vmem:[#allocation2 + $0x1b0] sm:$0xff]  ;;  %v2071_v55 = vld [vmem:[#allocation2 + $0x3a0] sm:$0xff]  ;;  %v572_v58 = vunpack.c.l.bf16 %v2057_v47  ;;  %v504_v62 = vunpack.c.l.bf16 %v2065_v52 }
  0x24   :  { %1548 = vmatmul.msk.f32.vlgmr.msra.gmra.mxu2 %vm120_vm0, %v1998_v11  ;;  %1549 = vmatmul.msk.f32.vlgmr.msra.gmra.mxu3 %vm120_vm0, %v1998_v11  ;;  %v2061_v49 = vld [vmem:[#allocation2 + $0x90] sm:$0xff]  ;;  %v2073_v56 = vld [vmem:[#allocation2 + $0x1a0] sm:$0xff]  ;;  %v444_v59 = vunpack.c.l.bf16 %v2059_v48  ;;  %v568_v2 = vunpack.c.l.bf16 %v2071_v55 }
  0x25   :  { %158 = vmatpush.msrb.mxu1 %v107_v15  ;;  %642 = vmatpush.msrb.mxu2 %v524_v20  ;;  %v2075_v57 = vld [vmem:[#allocation2 + $0x80] sm:$0xff]  ;;  %v2079_v60 = vld [vmem:[#allocation2 + $0x290] sm:$0xff]  ;;  %v372_v61 = vunpack.c.l.bf16 %v2061_v49  ;;  %v440_v3 = vunpack.c.l.bf16 %v2073_v56 }
  0x26   :  { %662 = vmatpush.msrb.mxu3 %v588_v21  ;;  %606 = vmatpush.msra.mxu0 %v380_v45  ;;  %v2083_v63 = vld [vmem:[#allocation2 + $0x390] sm:$0xff]  ;;  %v2091_v4 = vld [vmem:[#allocation2 + $0x280] sm:$0xff]  ;;  %v368_v5 = vunpack.c.l.bf16 %v2075_v57  ;;  %v500_v6 = vunpack.c.l.bf16 %v2079_v60 }
  0x27   :  { %159 = vmatpush.msrb.mxu1 %v103_v23  ;;  %643 = vmatpush.msrb.mxu2 %v520_v29  ;;  %v2085_v0 = vld [vmem:[#allocation2 + $0x190] sm:$0xff]  ;;  %v2095_v7 = vld [vmem:[#allocation2 + $0x380] sm:$0xff]  ;;  %v496_v23 = vunpack.c.l.bf16 %v2091_v4 }
  0x28   :  { %663 = vmatpush.msrb.mxu3 %v584_v31  ;;  %v2087_v1 = vld [vmem:[#allocation2 + $0x70] sm:$0xff]  ;;  %607 = vmatpush.msra.mxu0 %v376_v53  ;;  %v2097_v9 = vld [vmem:[#allocation2 + $0x180] sm:$0xff]  ;;  %v436_v15 = vunpack.c.l.bf16 %v2085_v0  ;;  %v560_v29 = vunpack.c.l.bf16 %v2095_v7 }
  0x29   :  { %622 = vmatpush.msra.mxu1 %v460_v28  ;;  %644 = vmatpush.msrb.mxu2 %v516_v36  ;;  %v2099_v10 = vld [vmem:[#allocation2 + $0x60] sm:$0xff]  ;;  %v2103_v16 = vld [vmem:[#allocation2 + $0x270] sm:$0xff]  ;;  %v364_v20 = vunpack.c.l.bf16 %v2087_v1  ;;  %v432_v31 = vunpack.c.l.bf16 %v2097_v9 }
  0x2a   :  { %664 = vmatpush.msrb.mxu3 %v580_v42  ;;  %608 = vmatpush.msra.mxu0 %v372_v61  ;;  %v2106_v21 = vld [vmem:[#allocation2 + $0x50] sm:$0xff]  ;;  %v2114_v30 = vld [vmem:[#allocation2 + $0x40] sm:$0xff]  ;;  %v360_v42 = vunpack.c.l.bf16 %v2099_v10 }
  0x2b   :  { %623 = vmatpush.msra.mxu1 %v456_v35  ;;  %645 = vmatpush.msrb.mxu2 %v512_v46  ;;  %v2109_v24 = vld [vmem:[#allocation2 + $0x370] sm:$0xff]  ;;  %v2117_v35 = vld [vmem:[#allocation2 + $0x260] sm:$0xff] }
  0x2c   :  { %1547 = vmatmul.msk.f32.vlgmr.msrb.gmra.mxu1 %vm120_vm0, %v1998_v11  ;;  %665 = vmatpush.msrb.mxu3 %v576_v50  ;;  %v564_v11 = vunpack.c.l.bf16 %v2083_v63  ;;  %v2111_v28 = vld [vmem:[#allocation2 + $0x170] sm:$0xff]  ;;  %v2119_v36 = vld [vmem:[#allocation2 + $0x360] sm:$0xff] }
  0x2d   :  { %624 = vmatpush.msra.mxu1 %v452_v43  ;;  %646 = vmatpush.msrb.mxu2 %v508_v54  ;;  %v2121_v38 = vld [vmem:[#allocation2 + $0x160] sm:$0xff]  ;;  %v492_v43 = vunpack.c.l.bf16 %v2103_v16  ;;  %v2125_v45 = vld [vmem:[#allocation2 + $0x250] sm:$0xff]  ;;  %v428_v54 = vunpack.c.l.bf16 %v2111_v28  ;;  %v552_v61 = vunpack.c.l.bf16 %v2119_v36 }
  0x2e   :  { %666 = vmatpush.msrb.mxu3 %v572_v58  ;;  %2778 = vst [vmem:[#allocation8_spill] sm:$0xff] %v2121_v38  ;;  %609 = vmatpush.msra.mxu0 %v368_v5  ;;  %v2127_v46 = vld [vmem:[#allocation2 + $0x350] sm:$0xff]  ;;  %v356_v58 = vunpack.c.l.bf16 %v2106_v21  ;;  %v484_v5 = vunpack.c.l.bf16 %v2125_v45 }
  0x2f   :  { %625 = vmatpush.msra.mxu1 %v448_v51  ;;  %647 = vmatpush.msrb.mxu2 %v504_v62  ;;  %2779 = vst [vmem:[#allocation9_spill] sm:$0xff] %v2127_v46  ;;  %v2129_v50 = vld [vmem:[#allocation2 + $0x150] sm:$0xff]  ;;  %v556_v51 = vunpack.c.l.bf16 %v2109_v24  ;;  %v424_v62 = vunpack.c.l.bf16 %v2121_v38 }
  0x30   :  { %667 = vmatpush.msrb.mxu3 %v568_v2  ;;  %2780 = vst [vmem:[#allocation10_spill] sm:$0xff] %v2129_v50  ;;  %v2132_v53 = vld [vmem:[#allocation2 + $0x30] sm:$0xff]  ;;  %610 = vmatpush.msra.mxu0 %v364_v20  ;;  %v2139_v2 = vld [vmem:[#allocation2 + $0x240] sm:$0xff]  ;;  %v548_v20 = vunpack.c.l.bf16 %v2127_v46 }
  0x31   :  { %626 = vmatpush.msra.mxu1 %v444_v59  ;;  %648 = vmatpush.msrb.mxu2 %v500_v6  ;;  %2781 = vst [vmem:[#allocation11_spill] sm:$0xff] %v2132_v53  ;;  %v488_v59 = vunpack.c.l.bf16 %v2117_v35  ;;  %v2143_v6 = vld [vmem:[#allocation2 + $0x340] sm:$0xff]  ;;  %v2157_v38 = vld [vmem:[#allocation2 + $0x130] sm:$0xff] }
  0x32   :  { %668 = vmatpush.msrb.mxu3 %v564_v11  ;;  %2782 = vst [vmem:[#allocation12_spill] sm:$0xff] %v2139_v2  ;;  %611 = vmatpush.msra.mxu0 %v360_v42  ;;  %v2145_v11 = vld [vmem:[#allocation2 + $0x140] sm:$0xff]  ;;  %v480_v42 = vunpack.c.l.bf16 %v2139_v2 }
  0x33   :  { %627 = vmatpush.msra.mxu1 %v440_v3  ;;  %649 = vmatpush.msrb.mxu2 %v496_v23  ;;  %v352_v3 = vunpack.c.l.bf16 %v2114_v30  ;;  %2783 = vst [vmem:[#allocation13_spill] sm:$0xff] %v2143_v6  ;;  %v420_v23 = vunpack.c.l.bf16 %v2129_v50  ;;  %v416_v50 = vunpack.c.l.bf16 %v2145_v11  ;;  %v2163_v46 = vld [vmem:[#allocation2 + $0x220] sm:$0xff] }
  0x34   :  { %669 = vmatpush.msrb.mxu3 %v560_v29  ;;  %2784 = vst [vmem:[#allocation14_spill] sm:$0xff] %v2145_v11  ;;  %v2151_v29 = vld [vmem:[#allocation2 + $0x230] sm:$0xff]  ;;  %612 = vmatpush.msra.mxu0 %v356_v58  ;;  %v2167_v2 = vld [vmem:[#allocation2 + $0x320] sm:$0xff]  ;;  %v412_v11 = vunpack.c.l.bf16 %v2157_v38 }
  0x35   :  { %628 = vmatpush.msra.mxu1 %v436_v15  ;;  %650 = vmatpush.msrb.mxu2 %v492_v43  ;;  %v2147_v15 = vld [vmem:[#allocation2 + $0x20] sm:$0xff]  ;;  %2786 = vst [vmem:[#allocation16_spill] sm:$0xff] %v2151_v29  ;;  %v2155_v43 = vld [vmem:[#allocation2 + $0x330] sm:$0xff] }
  0x36   :  { %670 = vmatpush.msrb.mxu3 %v556_v51  ;;  %2785 = vst [vmem:[#allocation15_spill] sm:$0xff] %v2147_v15  ;;  %v2159_v51 = vld [vmem:[#allocation2 + $0x10] sm:$0xff]  ;;  %613 = vmatpush.msra.mxu0 %v352_v3  ;;  %v344_v58 = vunpack.c.l.bf16 %v2147_v15 }
  0x37   :  { %629 = vmatpush.msra.mxu1 %v432_v31  ;;  %v348_v31 = vunpack.c.l.bf16 %v2132_v53  ;;  %651 = vmatpush.msrb.mxu2 %v488_v59  ;;  %2787 = vst [vmem:[#allocation17_spill] sm:$0xff] %v2155_v43  ;;  %v476_v59 = vunpack.c.l.bf16 %v2151_v29  ;;  %v2169_v53 = vld [vmem:[#allocation2 + $0x120] sm:$0xff]  ;;  %v340_v3 = vunpack.c.l.bf16 %v2159_v51  ;;  %v2179_v15 = vld [vmem:[#allocation2 + $0x310] sm:$0xff] }
  0x38   :  { %2788 = vst [vmem:[#allocation18_spill] sm:$0xff] %v2157_v38  ;;  %671 = vmatpush.msrb.mxu3 %v552_v61  ;;  %v2171_v61 = vld [vmem:[#allocation2] sm:$0xff]  ;;  %v2183_v29 = vld [vmem:[#allocation2 + $0x110] sm:$0xff] }
  0x39   :  { %630 = vmatpush.msra.mxu1 %v428_v54  ;;  %2789 = vst [vmem:[#allocation19_spill] sm:$0xff] %v2159_v51  ;;  %v544_v54 = vunpack.c.l.bf16 %v2143_v6  ;;  %652 = vmatpush.msrb.mxu2 %v484_v5  ;;  %v2175_v6 = vld [vmem:[#allocation2 + $0x210] sm:$0xff]  ;;  %v472_v5 = vunpack.c.l.bf16 %v2163_v46  ;;  %v2189_v38 = vld [vmem:[#allocation2 + $0x300] sm:$0xff] }
  0x3a   :  { %2790 = vst [vmem:[#allocation20_spill] sm:$0xff] %v2169_v53  ;;  %672 = vmatpush.msrb.mxu3 %v548_v20  ;;  %614 = vmatpush.msra.mxu0 %v348_v31  ;;  %v536_v20 = vunpack.c.l.bf16 %v2167_v2  ;;  %v336_v31 = vunpack.c.l.bf16 %v2171_v61 }
  0x3b   :  { %631 = vmatpush.msra.mxu1 %v424_v62  ;;  %2791 = vst [vmem:[#allocation21_spill] sm:$0xff] %v2171_v61  ;;  %v540_v62 = vunpack.c.l.bf16 %v2155_v43  ;;  %653 = vmatpush.msrb.mxu2 %v480_v42  ;;  %v2185_v43 = vld [vmem:[#allocation2 + $0x200] sm:$0xff]  ;;  %v468_v42 = vunpack.c.l.bf16 %v2175_v6  ;;  %v528_v61 = vunpack.c.l.bf16 %v2189_v38 }
  0x3c   :  { %673 = vmatpush.msrb.mxu3 %v544_v54  ;;  %615 = vmatpush.msra.mxu0 %v344_v58  ;;  %v397_v54 = vunpack.c.h.bf16 %v1993_v8  ;;  %v464_v51 = vunpack.c.l.bf16 %v2185_v43  ;;  %v2195_v58 = vld [vmem:[#allocation2 + $0x100] sm:$0xff]  ;;  %v589_v8 = vunpack.c.h.bf16 %v2004_v14  ;;  %v517_v14 = vunpack.c.h.bf16 %v2022_v26 }
  0x3d   :  { %632 = vmatpush.msra.mxu1 %v420_v23  ;;  %v408_v23 = vunpack.c.l.bf16 %v2169_v53  ;;  %654 = vmatpush.msrb.mxu2 %v476_v59  ;;  %v404_v53 = vunpack.c.l.bf16 %v2183_v29  ;;  %v393_v59 = vunpack.c.h.bf16 %v2000_v12  ;;  %v461_v12 = vunpack.c.h.bf16 %v2007_v17 }
  0x3e   :  { %674 = vmatpush.msrb.mxu3 %v540_v62  ;;  %616 = vmatpush.msra.mxu0 %v340_v3  ;;  %v525_v62 = vunpack.c.h.bf16 %v2002_v13  ;;  %v400_v3 = vunpack.c.l.bf16 %v2195_v58  ;;  %v385_v13 = vunpack.c.h.bf16 %v2028_v27  ;;  %v513_v17 = vunpack.c.h.bf16 %v2042_v37 }
  0x3f   :  { %633 = vmatpush.msra.mxu1 %v416_v50  ;;  %v532_v50 = vunpack.c.l.bf16 %v2179_v15  ;;  %655 = vmatpush.msrb.mxu2 %v472_v5  ;;  %v521_v5 = vunpack.c.h.bf16 %v2009_v18  ;;  %v381_v18 = vunpack.c.h.bf16 %v2038_v34  ;;  %v577_v27 = vunpack.c.h.bf16 %v2045_v39 }
  0x40   :  { %675 = vmatpush.msrb.mxu3 %v536_v20  ;;  %617 = vmatpush.msra.mxu0 %v336_v31  ;;  %v585_v20 = vunpack.c.h.bf16 %v2015_v22  ;;  %v453_v22 = vunpack.c.h.bf16 %v2036_v33  ;;  %v377_v26 = vunpack.c.h.bf16 %v2049_v41  ;;  %v573_v34 = vunpack.c.h.bf16 %v2057_v47  ;;  %v2796_v31 = vld [vmem:[#allocation16_spill] sm:$0xff] }
  0x41   :  { %634 = vmatpush.msra.mxu1 %v412_v11  ;;  %656 = vmatpush.msrb.mxu2 %v468_v42  ;;  %v389_v11 = vunpack.c.h.bf16 %v2011_v19  ;;  %v457_v19 = vunpack.c.h.bf16 %v2020_v25  ;;  %v509_v25 = vunpack.c.h.bf16 %v2053_v44  ;;  %v373_v37 = vunpack.c.h.bf16 %v2061_v49 }
  0x42   :  { %682 = vmatpush.msrb.mxu0 %v397_v54  ;;  %676 = vmatpush.msrb.mxu3 %v532_v50  ;;  %v505_v33 = vunpack.c.h.bf16 %v2065_v52  ;;  %v445_v39 = vunpack.c.h.bf16 %v2059_v48  ;;  %v569_v41 = vunpack.c.h.bf16 %v2071_v55  ;;  %v369_v44 = vunpack.c.h.bf16 %v2075_v57 }
  0x43   :  { %635 = vmatpush.msra.mxu1 %v408_v23  ;;  %657 = vmatpush.msrb.mxu2 %v464_v51  ;;  %v581_v23 = vunpack.c.h.bf16 %v2034_v32  ;;  %v449_v32 = vunpack.c.h.bf16 %v2047_v40  ;;  %v501_v40 = vunpack.c.h.bf16 %v2079_v60  ;;  %v441_v47 = vunpack.c.h.bf16 %v2073_v56  ;;  %v2794_v51 = vld [vmem:[#allocation12_spill] sm:$0xff] }
  0x44   :  { %683 = vmatpush.msrb.mxu0 %v393_v59  ;;  %677 = vmatpush.msrb.mxu3 %v528_v61  ;;  %v565_v49 = vunpack.c.h.bf16 %v2083_v63  ;;  %v365_v52 = vunpack.c.h.bf16 %v2087_v1  ;;  %v497_v48 = vunpack.c.h.bf16 %v2091_v4  ;;  %v437_v55 = vunpack.c.h.bf16 %v2085_v0 }
  0x45   :  { %636 = vmatpush.msra.mxu1 %v404_v53  ;;  %722 = vmatpush.msra.mxu2 %v525_v62  ;;  %v561_v57 = vunpack.c.h.bf16 %v2095_v7  ;;  %v361_v60 = vunpack.c.h.bf16 %v2099_v10  ;;  %v493_v56 = vunpack.c.h.bf16 %v2103_v16  ;;  %v433_v63 = vunpack.c.h.bf16 %v2097_v9 }
  0x46   :  { %742 = vmatpush.msra.mxu3 %v589_v8  ;;  %684 = vmatpush.msrb.mxu0 %v389_v11  ;;  %v557_v1 = vunpack.c.h.bf16 %v2109_v24  ;;  %v357_v4 = vunpack.c.h.bf16 %v2106_v21  ;;  %v489_v0 = vunpack.c.h.bf16 %v2117_v35  ;;  %v429_v7 = vunpack.c.h.bf16 %v2111_v28  ;;  %v2792_v24 = vld [vmem:[#allocation9_spill] sm:$0xff]  ;;  %v2793_v21 = vld [vmem:[#allocation11_spill] sm:$0xff] }
  0x47   :  { %637 = vmatpush.msra.mxu1 %v400_v3  ;;  %723 = vmatpush.msra.mxu2 %v521_v5  ;;  %v553_v10 = vunpack.c.h.bf16 %v2119_v36  ;;  %v353_v16 = vunpack.c.h.bf16 %v2114_v30  ;;  %v485_v9 = vunpack.c.h.bf16 %v2125_v45  ;;  %v549_v53 = vunpack.c.h.bf16 %v2792_v24  ;;  %v2795_v28 = vld [vmem:[#allocation13_spill] sm:$0xff] }
  0x48   :  { %685 = vmatpush.msrb.mxu0 %v385_v13  ;;  %743 = vmatpush.msra.mxu3 %v585_v20  ;;  %v349_v35 = vunpack.c.h.bf16 %v2793_v21  ;;  %v481_v61 = vunpack.c.h.bf16 %v2794_v51  ;;  %v545_v36 = vunpack.c.h.bf16 %v2795_v28  ;;  %v477_v30 = vunpack.c.h.bf16 %v2796_v31  ;;  %v2797_v45 = vld [vmem:[#allocation17_spill] sm:$0xff]  ;;  %v2305_v31 = vld [vmem:[#allocation2 + $0x2d8] sm:$0xff] }
  0x49   :  { %702 = vmatpush.msrb.mxu1 %v461_v12  ;;  %724 = vmatpush.msra.mxu2 %v517_v14  ;;  %v541_v42 = vunpack.c.h.bf16 %v2797_v45  ;;  %v473_v54 = vunpack.c.h.bf16 %v2163_v46  ;;  %v537_v50 = vunpack.c.h.bf16 %v2167_v2  ;;  %v469_v59 = vunpack.c.h.bf16 %v2175_v6  ;;  %v2798_v46 = vld [vmem:[#allocation15_spill] sm:$0xff]  ;;  %v2799_v2 = vld [vmem:[#allocation8_spill] sm:$0xff]  ;;  %v2298_v51 = vld [vmem:[#allocation2 + $0x1e8] sm:$0xff] }
  0x4a   :  { %686 = vmatpush.msrb.mxu0 %v381_v18  ;;  %744 = vmatpush.msra.mxu3 %v581_v23  ;;  %v533_v62 = vunpack.c.h.bf16 %v2179_v15  ;;  %v465_v8 = vunpack.c.h.bf16 %v2185_v43  ;;  %v529_v11 = vunpack.c.h.bf16 %v2189_v38  ;;  %v345_v3 = vunpack.c.h.bf16 %v2798_v46  ;;  %v2800_v6 = vld [vmem:[#allocation19_spill] sm:$0xff]  ;;  %v2801_v15 = vld [vmem:[#allocation10_spill] sm:$0xff]  ;;  %v2802_v43 = vld [vmem:[#allocation21_spill] sm:$0xff] }
  0x4b   :  { %703 = vmatpush.msrb.mxu1 %v457_v19  ;;  %725 = vmatpush.msra.mxu2 %v513_v17  ;;  %v425_v5 = vunpack.c.h.bf16 %v2799_v2  ;;  %v341_v12 = vunpack.c.h.bf16 %v2800_v6  ;;  %v421_v20 = vunpack.c.h.bf16 %v2801_v15  ;;  %v337_v13 = vunpack.c.h.bf16 %v2802_v43  ;;  %v2803_v38 = vld [vmem:[#allocation14_spill] sm:$0xff]  ;;  %v2805_v18 = vld [vmem:[#allocation20_spill] sm:$0xff]  ;;  %v2329_v6 = vld [vmem:[#allocation2 + $0x88] sm:$0xff] }
  0x4c   :  { %687 = vmatpush.msrb.mxu0 %v377_v26  ;;  %745 = vmatpush.msra.mxu3 %v577_v27  ;;  %v417_v14 = vunpack.c.h.bf16 %v2803_v38  ;;  %v2804_v19 = vld [vmem:[#allocation18_spill] sm:$0xff]  ;;  %v409_v17 = vunpack.c.h.bf16 %v2805_v18  ;;  %v401_v27 = vunpack.c.h.bf16 %v2195_v58  ;;  %v110_v26 = vld [vmem:[%s2806_s0] sm:$0xf]  ;;  %v518_v46 = vunpack.c.l.bf16 %v2305_v31  ;;  %v2335_v43 = vld [vmem:[#allocation2 + $0x2b8] sm:$0xff] }
  0x4d   :  { %704 = vmatpush.msrb.mxu1 %v453_v22  ;;  %726 = vmatpush.msra.mxu2 %v509_v25  ;;  %v413_v23 = vunpack.c.h.bf16 %v2804_v19  ;;  %v405_v22 = vunpack.c.h.bf16 %v2183_v29  ;;  %v112_v25 = vperm.slane %v110_v26, 0  ;;  %v2272_v29 = vld [vmem:[#allocation2 + $0xd8] sm:$0xff]  ;;  %v115_v58 = vperm.slane %v110_v26, 3 }
  0x4e   :  { %688 = vmatpush.msrb.mxu0 %v373_v37  ;;  %746 = vmatpush.msra.mxu3 %v573_v34  ;;  %v2338_v38 = vld [vmem:[#allocation2 + $0x3b8] sm:$0xff] }
  0x4f   :  { %705 = vmatpush.msrb.mxu1 %v449_v32  ;;  %727 = vmatpush.msra.mxu2 %v505_v33  ;;  %v2265_v32 = vld [vmem:[#allocation2 + $0xf8] sm:$0xff]  ;;  %v2267_v33 = vld [vmem:[#allocation2 + $0xe8] sm:$0xff] }
  0x50   :  { %689 = vmatpush.msrb.mxu0 %v369_v44  ;;  %747 = vmatpush.msra.mxu3 %v569_v41  ;;  %v114_v44 = vperm.slane %v110_v26, 2  ;;  %v2341_v19 = vld [vmem:[#allocation2 + $0x78] sm:$0xff] }
  0x51   :  { %706 = vmatpush.msrb.mxu1 %v445_v39  ;;  %728 = vmatpush.msra.mxu2 %v501_v40  ;;  %v398_v39 = vunpack.c.l.bf16 %v2265_v32  ;;  %v394_v40 = vunpack.c.l.bf16 %v2267_v33 }
  0x52   :  { %690 = vmatpush.msrb.mxu0 %v365_v52  ;;  %748 = vmatpush.msra.mxu3 %v565_v49  ;;  %v390_v49 = vunpack.c.l.bf16 %v2272_v29  ;;  %v2277_v52 = vld [vmem:[#allocation2 + $0xc8] sm:$0xff] }
  0x53   :  { %707 = vmatpush.msrb.mxu1 %v441_v47  ;;  %729 = vmatpush.msra.mxu2 %v497_v48  ;;  %v113_v47 = vperm.slane %v110_v26, 1  ;;  %v2279_v48 = vld [vmem:[#allocation2 + $0x2f8] sm:$0xff]  ;;  %v574_v26 = vunpack.c.l.bf16 %v2338_v38 }
  0x54   :  { %691 = vmatpush.msrb.mxu0 %v361_v60  ;;  %749 = vmatpush.msra.mxu3 %v561_v57  ;;  %v2281_v60 = vld [vmem:[#allocation2 + $0x3f8] sm:$0xff] }
  0x55   :  { %708 = vmatpush.msrb.mxu1 %v437_v55  ;;  %730 = vmatpush.msra.mxu2 %v493_v56  ;;  %v590_v21 = vunpack.c.l.bf16 %v2281_v60 }
  0x56   :  { %692 = vmatpush.msrb.mxu0 %v357_v4  ;;  %750 = vmatpush.msra.mxu3 %v557_v1  ;;  %v2283_v4 = vld [vmem:[#allocation2 + $0x1f8] sm:$0xff] }
  0x57   :  { %709 = vmatpush.msrb.mxu1 %v433_v63  ;;  %731 = vmatpush.msra.mxu2 %v489_v0  ;;  %v462_v28 = vunpack.c.l.bf16 %v2283_v4 }
  0x58   :  { %693 = vmatpush.msrb.mxu0 %v353_v16  ;;  %751 = vmatpush.msra.mxu3 %v553_v10  ;;  %v526_v10 = vunpack.c.l.bf16 %v2279_v48  ;;  %v2287_v16 = vld [vmem:[#allocation2 + $0xb8] sm:$0xff] }
  0x59   :  { %710 = vmatpush.msrb.mxu1 %v429_v7  ;;  %732 = vmatpush.msra.mxu2 %v485_v9  ;;  %v386_v7 = vunpack.c.l.bf16 %v2277_v52  ;;  %v2289_v9 = vld [vmem:[#allocation2 + $0x2e8] sm:$0xff] }
  0x5a   :  { %694 = vmatpush.msrb.mxu0 %v349_v35  ;;  %752 = vmatpush.msra.mxu3 %v549_v53  ;;  %v2296_v35 = vld [vmem:[#allocation2 + $0x3e8] sm:$0xff]  ;;  %v522_v45 = vunpack.c.l.bf16 %v2289_v9 }
  0x5b   :  { %733 = vmatpush.msra.mxu2 %v481_v61  ;;  %711 = vmatpush.msrb.mxu1 %v425_v5 }
  0x5c   :  { %753 = vmatpush.msra.mxu3 %v545_v36  ;;  %695 = vmatpush.msrb.mxu0 %v345_v3  ;;  %v2303_v36 = vld [vmem:[#allocation2 + $0xa8] sm:$0xff] }
  0x5d   :  { %734 = vmatpush.msra.mxu2 %v477_v30  ;;  %712 = vmatpush.msrb.mxu1 %v421_v20  ;;  %v382_v30 = vunpack.c.l.bf16 %v2287_v16  ;;  %v2324_v3 = vld [vmem:[#allocation2 + $0x3c8] sm:$0xff] }
  0x5e   :  { %754 = vmatpush.msra.mxu3 %v541_v42  ;;  %696 = vmatpush.msrb.mxu0 %v341_v12  ;;  %v2311_v42 = vld [vmem:[#allocation2 + $0x3d8] sm:$0xff]  ;;  %v2333_v20 = vld [vmem:[#allocation2 + $0x1c8] sm:$0xff] }
  0x5f   :  { %735 = vmatpush.msra.mxu2 %v473_v54  ;;  %713 = vmatpush.msrb.mxu1 %v417_v14  ;;  %v2313_v54 = vld [vmem:[#allocation2 + $0x1d8] sm:$0xff]  ;;  %v582_v2 = vunpack.c.l.bf16 %v2311_v42  ;;  %v370_v14 = vunpack.c.l.bf16 %v2329_v6  ;;  %v450_v18 = vunpack.c.l.bf16 %v2333_v20 }
  0x60   :  { %755 = vmatpush.msra.mxu3 %v537_v50  ;;  %697 = vmatpush.msrb.mxu0 %v337_v13  ;;  %v586_v50 = vunpack.c.l.bf16 %v2296_v35  ;;  %v454_v5 = vunpack.c.l.bf16 %v2313_v54  ;;  %v578_v13 = vunpack.c.l.bf16 %v2324_v3 }
  0x61   :  { %736 = vmatpush.msra.mxu2 %v469_v59  ;;  %714 = vmatpush.msrb.mxu1 %v413_v23  ;;  %v458_v59 = vunpack.c.l.bf16 %v2298_v51  ;;  %v2343_v23 = vld [vmem:[#allocation2 + $0x1b8] sm:$0xff] }
  0x62   :  { %756 = vmatpush.msra.mxu3 %v533_v62  ;;  %v2317_v62 = vld [vmem:[#allocation2 + $0x98] sm:$0xff] }
  0x63   :  { %737 = vmatpush.msra.mxu2 %v465_v8  ;;  %715 = vmatpush.msrb.mxu1 %v409_v17  ;;  %v2319_v8 = vld [vmem:[#allocation2 + $0x2c8] sm:$0xff]  ;;  %v374_v12 = vunpack.c.l.bf16 %v2317_v62  ;;  %v510_v17 = vunpack.c.l.bf16 %v2335_v43 }
  0x64   :  { %757 = vmatpush.msra.mxu3 %v529_v11  ;;  %v378_v11 = vunpack.c.l.bf16 %v2303_v36  ;;  %v514_v15 = vunpack.c.l.bf16 %v2319_v8 }
  0x65   :  { %716 = vmatpush.msrb.mxu1 %v405_v22  ;;  %v2347_v22 = vld [vmem:[#allocation2 + $0x2a8] sm:$0xff] }
  0x67   :  { %717 = vmatpush.msrb.mxu1 %v401_v27  ;;  %v2349_v27 = vld [vmem:[#allocation2 + $0x3a8] sm:$0xff] }
  0xa0   :  { %v141_v34 = vpop.f32.mrf.mxu1 }
  0xa1   :  { %v142_v37 = vadd.f32 %v141_v34, %v112_v25  ;;  %v2352_v25 = vld [vmem:[#allocation2 + $0x68] sm:$0xff] }
  0xa2   :  { %v2354_v34 = vld [vmem:[#allocation2 + $0x1a8] sm:$0xff] }
  0xa3   :  { %v2270_v41 = vmax.f32 %v142_v37, 0.0  ;;  %v366_v37 = vunpack.c.l.bf16 %v2341_v19 }
  0xa5   :  { %618 = vmatmul.f32.vlgmr.msra.gmra.mxu0 %v2270_v41 }
  0xa6   :  { %762 = vmatpush.msra.mxu0 %v398_v39  ;;  %v446_v39 = vunpack.c.l.bf16 %v2343_v23 }
  0xa7   :  { %v181_v55 = vpop.f32.mrf.mxu2  ;;  %v201_v57 = vpop.f32.mrf.mxu3 }
  0xa8   :  { %v182_v56 = vadd.f32 %v181_v55, %v114_v44  ;;  %v202_v63 = vadd.f32 %v201_v57, %v115_v58  ;;  %763 = vmatpush.msra.mxu0 %v394_v40  ;;  %v2359_v44 = vld [vmem:[#allocation2 + $0x298] sm:$0xff]  ;;  %v506_v40 = vunpack.c.l.bf16 %v2347_v22  ;;  %v362_v57 = vunpack.c.l.bf16 %v2352_v25 }
  0xa9   :  { %v161_v1 = vpop.f32.mrf.mxu1  ;;  %v2361_v58 = vld [vmem:[#allocation2 + $0x398] sm:$0xff] }
  0xaa   :  { %v162_v0 = vadd.f32 %v161_v1, %v113_v47  ;;  %v2291_v24 = vmax.f32 %v182_v56, 0.0  ;;  %v2293_v53 = vmax.f32 %v202_v63, 0.0  ;;  %764 = vmatpush.msra.mxu0 %v390_v49  ;;  %v570_v47 = vunpack.c.l.bf16 %v2349_v27  ;;  %v2366_v49 = vld [vmem:[#allocation2 + $0x58] sm:$0xff]  ;;  %v2372_v63 = vld [vmem:[#allocation2 + $0x288] sm:$0xff] }
  0xab   :  { %v2368_v55 = vld [vmem:[#allocation2 + $0x198] sm:$0xff]  ;;  %v442_v56 = vunpack.c.l.bf16 %v2354_v34  ;;  %v2374_v1 = vld [vmem:[#allocation2 + $0x388] sm:$0xff] }
  0xac   :  { %v2300_v61 = vmax.f32 %v162_v0, 0.0  ;;  %658 = vmatmul.f32.vlgmr.msrb.gmra.mxu2 %v2291_v24  ;;  %678 = vmatmul.f32.vlgmr.msrb.gmra.mxu3 %v2293_v53  ;;  %v502_v0 = vunpack.c.l.bf16 %v2359_v44 }
  0xad   :  { %765 = vmatpush.msra.mxu0 %v386_v7  ;;  %802 = vmatpush.msrb.mxu2 %v526_v10  ;;  %v566_v7 = vunpack.c.l.bf16 %v2361_v58  ;;  %v2379_v10 = vld [vmem:[#allocation2 + $0x48] sm:$0xff] }
  0xae   :  { %822 = vmatpush.msrb.mxu3 %v590_v21  ;;  %638 = vmatmul.f32.vlgmr.msra.gmra.mxu1 %v2300_v61  ;;  %v2381_v21 = vld [vmem:[#allocation2 + $0x188] sm:$0xff] }
  0xaf   :  { %698 = vmatmul.f32.vlgmr.msrb.gmra.mxu0 %v2270_v41  ;;  %782 = vmatpush.msra.mxu1 %v462_v28  ;;  %v358_v28 = vunpack.c.l.bf16 %v2366_v49 }
  0xb0   :  { %766 = vmatpush.msra.mxu0 %v382_v30  ;;  %803 = vmatpush.msrb.mxu2 %v522_v45  ;;  %v438_v30 = vunpack.c.l.bf16 %v2368_v55  ;;  %v2385_v45 = vld [vmem:[#allocation2 + $0x278] sm:$0xff] }
  0xb1   :  { %823 = vmatpush.msrb.mxu3 %v586_v50  ;;  %783 = vmatpush.msra.mxu1 %v458_v59  ;;  %v2387_v50 = vld [vmem:[#allocation2 + $0x378] sm:$0xff]  ;;  %v498_v59 = vunpack.c.l.bf16 %v2372_v63 }
  0xb2   :  { %767 = vmatpush.msra.mxu0 %v378_v11  ;;  %804 = vmatpush.msrb.mxu2 %v518_v46  ;;  %v562_v11 = vunpack.c.l.bf16 %v2374_v1  ;;  %v2391_v46 = vld [vmem:[#allocation2 + $0x38] sm:$0xff] }
  0xb3   :  { %824 = vmatpush.msrb.mxu3 %v582_v2  ;;  %784 = vmatpush.msra.mxu1 %v454_v5  ;;  %2807 = vst [vmem:[#allocation9_spill] sm:$0xff] %v2391_v46  ;;  %v2393_v2 = vld [vmem:[#allocation2 + $0x178] sm:$0xff]  ;;  %v354_v5 = vunpack.c.l.bf16 %v2379_v10 }
  0xb4   :  { %768 = vmatpush.msra.mxu0 %v374_v12  ;;  %805 = vmatpush.msrb.mxu2 %v514_v15  ;;  %2808 = vst [vmem:[#allocation11_spill] sm:$0xff] %v2393_v2  ;;  %v434_v12 = vunpack.c.l.bf16 %v2381_v21  ;;  %v2397_v15 = vld [vmem:[#allocation2 + $0x268] sm:$0xff] }
  0xb5   :  { %825 = vmatpush.msrb.mxu3 %v578_v13  ;;  %738 = vmatmul.f32.vlgmr.msra.gmra.mxu2 %v2291_v24  ;;  %2809 = vst [vmem:[#allocation12_spill] sm:$0xff] %v2397_v15  ;;  %v2399_v13 = vld [vmem:[#allocation2 + $0x368] sm:$0xff] }
  0xb6   :  { %758 = vmatmul.f32.vlgmr.msra.gmra.mxu3 %v2293_v53  ;;  %769 = vmatpush.msra.mxu0 %v370_v14  ;;  %2810 = vst [vmem:[#allocation13_spill] sm:$0xff] %v2399_v13  ;;  %v494_v14 = vunpack.c.l.bf16 %v2385_v45 }
  0xb7   :  { %785 = vmatpush.msra.mxu1 %v450_v18  ;;  %806 = vmatpush.msrb.mxu2 %v510_v17  ;;  %v558_v18 = vunpack.c.l.bf16 %v2387_v50  ;;  %v2403_v17 = vld [vmem:[#allocation2 + $0x28] sm:$0xff] }
  0xb8   :  { %826 = vmatpush.msrb.mxu3 %v574_v26  ;;  %718 = vmatmul.f32.vlgmr.msrb.gmra.mxu1 %v2300_v61  ;;  %2811 = vst [vmem:[#allocation16_spill] sm:$0xff] %v2403_v17  ;;  %v2405_v26 = vld [vmem:[#allocation2 + $0x168] sm:$0xff] }
  0xb9   :  { %770 = vmatpush.msra.mxu0 %v366_v37  ;;  %786 = vmatpush.msra.mxu1 %v446_v39  ;;  %2812 = vst [vmem:[#allocation17_spill] sm:$0xff] %v2405_v26  ;;  %v350_v37 = vunpack.c.l.bf16 %v2391_v46  ;;  %v430_v39 = vunpack.c.l.bf16 %v2393_v2  ;;  %v2421_v2 = vld [vmem:[#allocation2 + $0x248] sm:$0xff] }
  0xba   :  { %807 = vmatpush.msrb.mxu2 %v506_v40  ;;  %827 = vmatpush.msrb.mxu3 %v570_v47  ;;  %v2409_v40 = vld [vmem:[#allocation2 + $0x258] sm:$0xff]  ;;  %2816 = vst [vmem:[#allocation10_spill] sm:$0xff] %v2421_v2  ;;  %v2423_v46 = vld [vmem:[#allocation2 + $0x348] sm:$0xff] }
  0xbb   :  { %771 = vmatpush.msra.mxu0 %v362_v57  ;;  %787 = vmatpush.msra.mxu1 %v442_v56  ;;  %v2411_v47 = vld [vmem:[#allocation2 + $0x358] sm:$0xff]  ;;  %v490_v57 = vunpack.c.l.bf16 %v2397_v15  ;;  %v554_v56 = vunpack.c.l.bf16 %v2399_v13  ;;  %v2427_v13 = vld [vmem:[#allocation2 + $0x8] sm:$0xff] }
  0xbc   :  { %808 = vmatpush.msrb.mxu2 %v502_v0  ;;  %828 = vmatpush.msrb.mxu3 %v566_v7  ;;  %2813 = vst [vmem:[#allocation15_spill] sm:$0xff] %v2411_v47  ;;  %v2415_v0 = vld [vmem:[#allocation2 + $0x18] sm:$0xff]  ;;  %v2429_v15 = vld [vmem:[#allocation2 + $0x148] sm:$0xff] }
  0xbd   :  { %772 = vmatpush.msra.mxu0 %v358_v28  ;;  %788 = vmatpush.msra.mxu1 %v438_v30  ;;  %2814 = vst [vmem:[#allocation8_spill] sm:$0xff] %v2415_v0  ;;  %v2417_v7 = vld [vmem:[#allocation2 + $0x158] sm:$0xff]  ;;  %v346_v28 = vunpack.c.l.bf16 %v2403_v17  ;;  %v426_v30 = vunpack.c.l.bf16 %v2405_v26 }
  0xbe   :  { %809 = vmatpush.msrb.mxu2 %v498_v59  ;;  %829 = vmatpush.msrb.mxu3 %v562_v11  ;;  %2815 = vst [vmem:[#allocation19_spill] sm:$0xff] %v2417_v7  ;;  %v486_v59 = vunpack.c.l.bf16 %v2409_v40  ;;  %v550_v11 = vunpack.c.l.bf16 %v2411_v47  ;;  %v2433_v26 = vld [vmem:[#allocation2 + $0x238] sm:$0xff] }
  0xbf   :  { %773 = vmatpush.msra.mxu0 %v354_v5  ;;  %789 = vmatpush.msra.mxu1 %v434_v12  ;;  %2817 = vst [vmem:[#allocation21_spill] sm:$0xff] %v2429_v15  ;;  %v342_v5 = vunpack.c.l.bf16 %v2415_v0  ;;  %v422_v12 = vunpack.c.l.bf16 %v2417_v7  ;;  %v2435_v17 = vld [vmem:[#allocation2 + $0x338] sm:$0xff]  ;;  %v2443_v0 = vld [vmem:[#allocation2 + $0x228] sm:$0xff]  ;;  %v478_v7 = vunpack.c.l.bf16 %v2433_v26 }
  0xc0   :  { %810 = vmatpush.msrb.mxu2 %v494_v14  ;;  %830 = vmatpush.msrb.mxu3 %v558_v18  ;;  %2818 = vst [vmem:[#allocation14_spill] sm:$0xff] %v2433_v26  ;;  %v482_v14 = vunpack.c.l.bf16 %v2421_v2  ;;  %v546_v18 = vunpack.c.l.bf16 %v2423_v46  ;;  %v2439_v47 = vld [vmem:[#allocation2 + $0x138] sm:$0xff]  ;;  %v2449_v2 = vld [vmem:[#allocation2 + $0x128] sm:$0xff] }
  0xc1   :  { %774 = vmatpush.msra.mxu0 %v350_v37  ;;  %790 = vmatpush.msra.mxu1 %v430_v39  ;;  %2819 = vst [vmem:[#allocation18_spill] sm:$0xff] %v2435_v17  ;;  %v338_v37 = vunpack.c.l.bf16 %v2427_v13  ;;  %v418_v39 = vunpack.c.l.bf16 %v2429_v15  ;;  %v399_v15 = vunpack.c.h.bf16 %v2265_v32  ;;  %v2458_v26 = vld [vmem:[#allocation2 + $0x118] sm:$0xff] }
  0xc2   :  { %811 = vmatpush.msrb.mxu2 %v490_v57  ;;  %831 = vmatpush.msrb.mxu3 %v554_v56  ;;  %v542_v57 = vunpack.c.l.bf16 %v2435_v17  ;;  %v2447_v56 = vld [vmem:[#allocation2 + $0x328] sm:$0xff]  ;;  %2820 = vst [vmem:[#allocation20_spill] sm:$0xff] %v2449_v2 }
  0xc3   :  { %775 = vmatpush.msra.mxu0 %v346_v28  ;;  %791 = vmatpush.msra.mxu1 %v426_v30  ;;  %v414_v28 = vunpack.c.l.bf16 %v2439_v47  ;;  %v2452_v30 = vld [vmem:[#allocation2 + $0x218] sm:$0xff]  ;;  %2821 = vst [vmem:[#allocation22_spill] sm:$0xff] %v2458_v26  ;;  %v538_v17 = vunpack.c.l.bf16 %v2447_v56 }
  0xc4   :  { %812 = vmatpush.msrb.mxu2 %v486_v59  ;;  %832 = vmatpush.msrb.mxu3 %v550_v11  ;;  %v474_v59 = vunpack.c.l.bf16 %v2443_v0  ;;  %v2456_v11 = vld [vmem:[#allocation2 + $0x318] sm:$0xff]  ;;  %v470_v32 = vunpack.c.l.bf16 %v2452_v30 }
  0xc5   :  { %776 = vmatpush.msra.mxu0 %v342_v5  ;;  %792 = vmatpush.msra.mxu1 %v422_v12  ;;  %v410_v5 = vunpack.c.l.bf16 %v2449_v2  ;;  %v2462_v12 = vld [vmem:[#allocation2 + $0x208] sm:$0xff]  ;;  %v391_v2 = vunpack.c.h.bf16 %v2272_v29 }
  0xc6   :  { %813 = vmatpush.msrb.mxu2 %v482_v14  ;;  %833 = vmatpush.msrb.mxu3 %v546_v18  ;;  %v395_v14 = vunpack.c.h.bf16 %v2267_v33  ;;  %v2466_v18 = vld [vmem:[#allocation2 + $0x308] sm:$0xff] }
  0xc7   :  { %777 = vmatpush.msra.mxu0 %v338_v37  ;;  %793 = vmatpush.msra.mxu1 %v418_v39  ;;  %v534_v37 = vunpack.c.l.bf16 %v2456_v11  ;;  %v406_v39 = vunpack.c.l.bf16 %v2458_v26  ;;  %v530_v33 = vunpack.c.l.bf16 %v2466_v18  ;;  %v527_v26 = vunpack.c.h.bf16 %v2279_v48 }
  0xc8   :  { %814 = vmatpush.msrb.mxu2 %v478_v7  ;;  %834 = vmatpush.msrb.mxu3 %v542_v57  ;;  %v466_v7 = vunpack.c.l.bf16 %v2462_v12  ;;  %v2474_v57 = vld [vmem:[#allocation2 + $0x108] sm:$0xff]  ;;  %v587_v48 = vunpack.c.h.bf16 %v2296_v35  ;;  %v455_v35 = vunpack.c.h.bf16 %v2313_v54  ;;  %v507_v54 = vunpack.c.h.bf16 %v2347_v22 }
  0xc9   :  { %778 = vmatmul.f32.vlgmr.msra.gmra.mxu0 %v2270_v41  ;;  %794 = vmatpush.msra.mxu1 %v414_v28  ;;  %v387_v28 = vunpack.c.h.bf16 %v2277_v52  ;;  %v402_v29 = vunpack.c.l.bf16 %v2474_v57  ;;  %v463_v52 = vunpack.c.h.bf16 %v2283_v4  ;;  %v515_v4 = vunpack.c.h.bf16 %v2319_v8 }
  0xca   :  { %842 = vmatpush.msrb.mxu0 %v399_v15  ;;  %815 = vmatpush.msrb.mxu2 %v474_v59  ;;  %v591_v15 = vunpack.c.h.bf16 %v2281_v60  ;;  %v523_v59 = vunpack.c.h.bf16 %v2289_v9  ;;  %v379_v60 = vunpack.c.h.bf16 %v2303_v36  ;;  %v375_v9 = vunpack.c.h.bf16 %v2317_v62 }
  0xcb   :  { %835 = vmatpush.msrb.mxu3 %v538_v17  ;;  %795 = vmatpush.msra.mxu1 %v410_v5  ;;  %v383_v17 = vunpack.c.h.bf16 %v2287_v16  ;;  %v459_v16 = vunpack.c.h.bf16 %v2298_v51  ;;  %v583_v5 = vunpack.c.h.bf16 %v2311_v42  ;;  %v579_v36 = vunpack.c.h.bf16 %v2324_v3 }
  0xcc   :  { %843 = vmatpush.msrb.mxu0 %v395_v14  ;;  %816 = vmatpush.msrb.mxu2 %v470_v32  ;;  %v511_v51 = vunpack.c.h.bf16 %v2335_v43  ;;  %v451_v42 = vunpack.c.h.bf16 %v2333_v20  ;;  %v575_v62 = vunpack.c.h.bf16 %v2338_v38  ;;  %v367_v8 = vunpack.c.h.bf16 %v2341_v19  ;;  %v2823_v14 = vld [vmem:[#allocation12_spill] sm:$0xff] }
  0xcd   :  { %836 = vmatpush.msrb.mxu3 %v534_v37  ;;  %796 = vmatpush.msra.mxu1 %v406_v39  ;;  %v447_v3 = vunpack.c.h.bf16 %v2343_v23  ;;  %v363_v43 = vunpack.c.h.bf16 %v2352_v25  ;;  %v503_v20 = vunpack.c.h.bf16 %v2359_v44  ;;  %v443_v38 = vunpack.c.h.bf16 %v2354_v34  ;;  %v2825_v37 = vld [vmem:[#allocation13_spill] sm:$0xff] }
  0xce   :  { %844 = vmatpush.msrb.mxu0 %v391_v2  ;;  %817 = vmatpush.msrb.mxu2 %v466_v7  ;;  %v519_v2 = vunpack.c.h.bf16 %v2305_v31  ;;  %v371_v31 = vunpack.c.h.bf16 %v2329_v6  ;;  %v571_v6 = vunpack.c.h.bf16 %v2349_v27  ;;  %v567_v19 = vunpack.c.h.bf16 %v2361_v58 }
  0xcf   :  { %837 = vmatpush.msrb.mxu3 %v530_v33  ;;  %818 = vmatmul.f32.vlgmr.msrb.gmra.mxu2 %v2291_v24  ;;  %v359_v22 = vunpack.c.h.bf16 %v2366_v49  ;;  %v499_v23 = vunpack.c.h.bf16 %v2372_v63  ;;  %v439_v27 = vunpack.c.h.bf16 %v2368_v55  ;;  %v563_v25 = vunpack.c.h.bf16 %v2374_v1  ;;  %v2822_v63 = vld [vmem:[#allocation9_spill] sm:$0xff]  ;;  %v2824_v1 = vld [vmem:[#allocation11_spill] sm:$0xff] }
  0xd0   :  { %838 = vmatmul.f32.vlgmr.msrb.gmra.mxu3 %v2293_v53  ;;  %845 = vmatpush.msrb.mxu0 %v387_v28  ;;  %v355_v44 = vunpack.c.h.bf16 %v2379_v10  ;;  %v495_v34 = vunpack.c.h.bf16 %v2385_v45  ;;  %v435_v58 = vunpack.c.h.bf16 %v2381_v21  ;;  %v559_v49 = vunpack.c.h.bf16 %v2387_v50  ;;  %v2826_v45 = vld [vmem:[#allocation16_spill] sm:$0xff]  ;;  %v2827_v50 = vld [vmem:[#allocation17_spill] sm:$0xff]  ;;  %v2828_v33 = vld [vmem:[#allocation15_spill] sm:$0xff] }
  0xd1   :  { %882 = vmatpush.msra.mxu2 %v527_v26  ;;  %902 = vmatpush.msra.mxu3 %v591_v15  ;;  %v351_v26 = vunpack.c.h.bf16 %v2822_v63  ;;  %v491_v55 = vunpack.c.h.bf16 %v2823_v14  ;;  %v431_v32 = vunpack.c.h.bf16 %v2824_v1  ;;  %v555_v10 = vunpack.c.h.bf16 %v2825_v37  ;;  %v2829_v15 = vld [vmem:[#allocation8_spill] sm:$0xff]  ;;  %v1754_v14 = vld [vmem:[#allocation4 + $0x70] sm:$0xff]  }
  0xd2   :  { %797 = vmatpush.msra.mxu1 %v402_v29  ;;  %846 = vmatpush.msrb.mxu0 %v383_v17  ;;  %v347_v39 = vunpack.c.h.bf16 %v2826_v45  ;;  %v487_v21 = vunpack.c.h.bf16 %v2409_v40  ;;  %v427_v7 = vunpack.c.h.bf16 %v2827_v50  ;;  %v551_v28 = vunpack.c.h.bf16 %v2828_v33  ;;  %v2830_v17 = vld [vmem:[#allocation10_spill] sm:$0xff] }
  0xd3   :  { %798 = vmatmul.f32.vlgmr.msra.gmra.mxu1 %v2300_v61  ;;  %883 = vmatpush.msra.mxu2 %v523_v59  ;;  %v343_v29 = vunpack.c.h.bf16 %v2829_v15  ;;  %v483_v59 = vunpack.c.h.bf16 %v2830_v17  ;;  %v339_v40 = vunpack.c.h.bf16 %v2427_v13  ;;  %v471_v13 = vunpack.c.h.bf16 %v2452_v30  ;;  %v1753_v15 = vld [vmem:[#allocation4 + $0x68] sm:$0xff]  }
  0xd4   :  { %862 = vmatpush.msrb.mxu1 %v463_v52  ;;  %903 = vmatpush.msra.mxu3 %v587_v48  ;;  %v2831_v52 = vld [vmem:[#allocation19_spill] sm:$0xff]  ;;  %v403_v30 = vunpack.c.h.bf16 %v2474_v57  ;;  %v1612_v37 = vunpack.c.h.bf16 %v1754_v14  ;;  %v1611_v33 = vunpack.c.l.bf16 %v1754_v14 }
  0xd5   :  { %847 = vmatpush.msrb.mxu0 %v379_v60  ;;  %884 = vmatpush.msra.mxu2 %v519_v2  ;;  %v423_v48 = vunpack.c.h.bf16 %v2831_v52  ;;  %v547_v60 = vunpack.c.h.bf16 %v2423_v46  ;;  %v2832_v2 = vld [vmem:[#allocation14_spill] sm:$0xff]  ;;  %v415_v46 = vunpack.c.h.bf16 %v2439_v47 }
  0xd6   :  { %863 = vmatpush.msrb.mxu1 %v459_v16  ;;  %904 = vmatpush.msra.mxu3 %v583_v5  ;;  %v479_v16 = vunpack.c.h.bf16 %v2832_v2  ;;  %v2833_v5 = vld [vmem:[#allocation21_spill] sm:$0xff]  ;;  %v2836_v47 = vld [vmem:[#allocation22_spill] sm:$0xff] }
  0xd7   :  { %848 = vmatpush.msrb.mxu0 %v375_v9  ;;  %885 = vmatpush.msra.mxu2 %v515_v4  ;;  %v419_v9 = vunpack.c.h.bf16 %v2833_v5  ;;  %v2834_v4 = vld [vmem:[#allocation18_spill] sm:$0xff] }
  0xd8   :  { %864 = vmatpush.msrb.mxu1 %v455_v35  ;;  %905 = vmatpush.msra.mxu3 %v579_v36  ;;  %v543_v35 = vunpack.c.h.bf16 %v2834_v4  ;;  %v475_v36 = vunpack.c.h.bf16 %v2443_v0  ;;  %v467_v0 = vunpack.c.h.bf16 %v2462_v12 }
  0xd9   :  { %849 = vmatpush.msrb.mxu0 %v371_v31  ;;  %886 = vmatpush.msra.mxu2 %v511_v51  ;;  %v539_v31 = vunpack.c.h.bf16 %v2447_v56  ;;  %v2835_v51 = vld [vmem:[#allocation20_spill] sm:$0xff]  ;;  %v531_v56 = vunpack.c.h.bf16 %v2466_v18 }
  0xda   :  { %865 = vmatpush.msrb.mxu1 %v451_v42  ;;  %906 = vmatpush.msra.mxu3 %v575_v62  ;;  %v411_v42 = vunpack.c.h.bf16 %v2835_v51  ;;  %v535_v62 = vunpack.c.h.bf16 %v2456_v11  ;;  %v1747_v11 = vld [vmem:[#allocation4 + $0x38] sm:$0xff]  }
  0xdb   :  { %850 = vmatpush.msrb.mxu0 %v367_v8  ;;  %887 = vmatpush.msra.mxu2 %v507_v54  ;;  %v407_v8 = vunpack.c.h.bf16 %v2836_v47  ;;  %v1584_v57 = vunpack.c.h.bf16 %v1747_v11  ;;  %v1583_v54 = vunpack.c.l.bf16 %v1747_v11 }
  0xdc   :  { %866 = vmatpush.msrb.mxu1 %v447_v3  ;;  %907 = vmatpush.msra.mxu3 %v571_v6  ;;  %v1746_v6 = vld [vmem:[#allocation4 + $0x30] sm:$0xff]  }
  0xdd   :  { %851 = vmatpush.msrb.mxu0 %v363_v43  ;;  %888 = vmatpush.msra.mxu2 %v503_v20 }
  0xde   :  { %867 = vmatpush.msrb.mxu1 %v443_v38  ;;  %908 = vmatpush.msra.mxu3 %v567_v19  ;;  %v1745_v38 = vld [vmem:[#allocation4 + $0x28] sm:$0xff]   ;;  %v1755_v19 = vld [vmem:[#allocation4 + $0x78] sm:$0xff]  }
  0xdf   :  { %852 = vmatpush.msrb.mxu0 %v359_v22  ;;  %889 = vmatpush.msra.mxu2 %v499_v23  ;;  %v1615_v63 = vunpack.c.l.bf16 %v1755_v19 }
  0xe0   :  { %868 = vmatpush.msrb.mxu1 %v439_v27  ;;  %909 = vmatpush.msra.mxu3 %v563_v25  ;;  %v1576_v27 = vunpack.c.h.bf16 %v1745_v38  ;;  %v1616_v25 = vunpack.c.h.bf16 %v1755_v19 }
  0xe1   :  { %853 = vmatpush.msrb.mxu0 %v355_v44  ;;  %890 = vmatpush.msra.mxu2 %v495_v34 }
  0xe2   :  { %869 = vmatpush.msrb.mxu1 %v435_v58  ;;  %910 = vmatpush.msra.mxu3 %v559_v49  ;;  %v1575_v49 = vunpack.c.l.bf16 %v1745_v38 }
  0xe3   :  { %854 = vmatpush.msrb.mxu0 %v351_v26  ;;  %891 = vmatpush.msra.mxu2 %v491_v55  ;;  %v1744_v26 = vld [vmem:[#allocation4 + $0x20] sm:$0xff]  }
  0xe4   :  { %870 = vmatpush.msrb.mxu1 %v431_v32  ;;  %911 = vmatpush.msra.mxu3 %v555_v10  ;;  %v1572_v32 = vunpack.c.h.bf16 %v1744_v26  ;;  %v1571_v50 = vunpack.c.l.bf16 %v1744_v26 }
  0xe5   :  { %855 = vmatpush.msrb.mxu0 %v347_v39  ;;  %892 = vmatpush.msra.mxu2 %v487_v21 }
  0xe6   :  { %871 = vmatpush.msrb.mxu1 %v427_v7  ;;  %912 = vmatpush.msra.mxu3 %v551_v28  ;;  %v1743_v28 = vld [vmem:[#allocation4 + $0x18] sm:$0xff]  }
  0xe7   :  { %856 = vmatpush.msrb.mxu0 %v343_v29  ;;  %893 = vmatpush.msra.mxu2 %v483_v59  ;;  %v1568_v52 = vunpack.c.h.bf16 %v1743_v28  ;;  %v1567_v5 = vunpack.c.l.bf16 %v1743_v28  ;;  %v1762_v28 = vld [vmem:[#allocation4 + $0xb0] sm:$0xff]  }
  0xe8   :  { %872 = vmatpush.msrb.mxu1 %v423_v48  ;;  %913 = vmatpush.msra.mxu3 %v547_v60  ;;  %v1608_v48 = vunpack.c.h.bf16 %v1753_v15 }
  0xe9   :  { %857 = vmatpush.msrb.mxu0 %v339_v40  ;;  %894 = vmatpush.msra.mxu2 %v479_v16 }
  0xea   :  { %873 = vmatpush.msrb.mxu1 %v419_v9  ;;  %914 = vmatpush.msra.mxu3 %v543_v35  ;;  %v1607_v9 = vunpack.c.l.bf16 %v1753_v15  ;;  %v1742_v35 = vld [vmem:[#allocation4 + $0x10] sm:$0xff]  }
  0xeb   :  { %858 = vmatmul.f32.vlgmr.msrb.gmra.mxu0 %v2270_v41  ;;  %895 = vmatpush.msra.mxu2 %v475_v36  ;;  %v2548_v41 = vld [vmem:[%s2837_s22] sm:$0xf] }
  0xec   :  { %874 = vmatpush.msrb.mxu1 %v415_v46  ;;  %915 = vmatpush.msra.mxu3 %v539_v31  ;;  %v594_v12 = vperm.slane %v2548_v41, 0  ;;  %v595_v44 = vperm.slane %v2548_v41, 1  ;;  %v1752_v36 = vld [vmem:[#allocation4 + $0x60] sm:$0xff]  }
  0xed   :  { %896 = vmatpush.msra.mxu2 %v471_v13  ;;  %1206 = vmatpush.msra.mxu0 %v1584_v57  ;;  %v1564_v13 = vunpack.c.h.bf16 %v1742_v35  ;;  %v1604_v51 = vunpack.c.h.bf16 %v1752_v36 }
  0xee   :  { %875 = vmatpush.msrb.mxu1 %v411_v42  ;;  %916 = vmatpush.msra.mxu3 %v535_v62 }
  0xef   :  { %897 = vmatpush.msra.mxu2 %v467_v0  ;;  %1207 = vmatpush.msra.mxu0 %v1583_v54 }
  0xf0   :  { %876 = vmatpush.msrb.mxu1 %v407_v8  ;;  %917 = vmatpush.msra.mxu3 %v531_v56  ;;  %v1563_v8 = vunpack.c.l.bf16 %v1742_v35  ;;  %v1603_v56 = vunpack.c.l.bf16 %v1752_v36 }
  0xf1   :  { %898 = vmatmul.f32.vlgmr.msra.gmra.mxu2 %v2291_v24  ;;  %918 = vmatmul.f32.vlgmr.msra.gmra.mxu3 %v2293_v53  ;;  %v1580_v53 = vunpack.c.h.bf16 %v1746_v6 }
  0xf2   :  { %877 = vmatpush.msrb.mxu1 %v403_v30 }
  0xf3   :  { %878 = vmatmul.f32.vlgmr.msrb.gmra.mxu1 %v2300_v61  ;;  %1208 = vmatpush.msra.mxu0 %v1580_v53  ;;  %v1579_v61 = vunpack.c.l.bf16 %v1746_v6 }
  0xf4   :  { %1226 = vmatpush.msra.mxu1 %v1616_v25 }
  0xf5   :  { %1209 = vmatpush.msra.mxu0 %v1579_v61 }
  0xf6   :  { %1227 = vmatpush.msra.mxu1 %v1615_v63 }
  0xf7   :  { %1210 = vmatpush.msra.mxu0 %v1576_v27  ;;  %v1750_v27 = vld [vmem:[#allocation4 + $0x50] sm:$0xff]  }
  0xf8   :  { %1228 = vmatpush.msra.mxu1 %v1612_v37 }
  0xf9   :  { %1211 = vmatpush.msra.mxu0 %v1575_v49 }
  0xfa   :  { %1229 = vmatpush.msra.mxu1 %v1611_v33 }
  0xfb   :  { %1212 = vmatpush.msra.mxu0 %v1572_v32 }
  0xfc   :  { %1230 = vmatpush.msra.mxu1 %v1608_v48 }
  0xfd   :  { %1213 = vmatpush.msra.mxu0 %v1571_v50 }
  0xfe   :  { %1231 = vmatpush.msra.mxu1 %v1607_v9  ;;  %v1761_v9 = vld [vmem:[#allocation4 + $0xa8] sm:$0xff]  }
  0xff   :  { %1214 = vmatpush.msra.mxu0 %v1568_v52  ;;  %v1748_v52 = vld [vmem:[#allocation4 + $0x40] sm:$0xff]  }
 0x100   :  { %1232 = vmatpush.msra.mxu1 %v1604_v51 }
 0x101   :  { %1215 = vmatpush.msra.mxu0 %v1567_v5  ;;  %v1587_v5 = vunpack.c.l.bf16 %v1748_v52 }
 0x102   :  { %1233 = vmatpush.msra.mxu1 %v1603_v56 }
 0x103   :  { %1216 = vmatpush.msra.mxu0 %v1564_v13 }
 0x105   :  { %1217 = vmatpush.msra.mxu0 %v1563_v8 }
 0x122   :  { %v619_v18 = vpop.f32.mrf.mxu0 }
 0x123   :  { %v620_v24 = vadd.f32 %v619_v18, %v594_v12  ;;  %v1741_v12 = vld [vmem:[#allocation4 + $0x8] sm:$0xff]   ;;  %v1751_v18 = vld [vmem:[#allocation4 + $0x58] sm:$0xff]  }
 0x124   :  { %v1600_v6 = vunpack.c.h.bf16 %v1751_v18 }
 0x126   :  { %1234 = vmatpush.msra.mxu1 %v1600_v6  ;;  %v1759_v6 = vld [vmem:[#allocation4 + $0x98] sm:$0xff]  }
 0x12b   :  { %v639_v3 = vpop.f32.mrf.mxu1 }
 0x12c   :  { %v640_v43 = vadd.f32 %v639_v3, %v620_v24  ;;  %v699_v34 = vpop.f32.mrf.mxu0  ;;  %v1560_v3 = vunpack.c.h.bf16 %v1741_v12 }
 0x12d   :  { %v700_v10 = vadd.f32 %v699_v34, %v595_v44  ;;  %v1596_v34 = vunpack.c.h.bf16 %v1750_v27 }
 0x12e   :  { %1218 = vmatpush.msra.mxu0 %v1560_v3 }
 0x12f   :  { %v659_v20 = vpop.f32.mrf.mxu2  ;;  %v679_v23 = vpop.f32.mrf.mxu3 }
 0x130   :  { %v660_v22 = vadd.f32 %v659_v20, %v640_v43  ;;  %v1559_v20 = vunpack.c.l.bf16 %v1741_v12 }
 0x132   :  { %v2552_v58 = vadd.f32 %v679_v23, %v660_v22  ;;  %v1599_v22 = vunpack.c.l.bf16 %v1751_v18  ;;  %v1554_v23 = vld [vmem:[#allocation4] sm:$0xff]   ;;  %1219 = vmatpush.msra.mxu0 %v1559_v20 }
 0x133   :  { %v1556_v44 = vunpack.c.h.bf16 %v1554_v23  ;;  %v1555_v14 = vunpack.c.l.bf16 %v1554_v23  ;;  %v2594_v20 = vld [vmem:[%s2724_s6] sm:$0xf] }
 0x134   :  { %v924_v55 = vrot.slane %v2552_v58, 4  ;;  %v948_v1 = vmul.f32 %v2552_v58, %v2552_v58  ;;  %1235 = vmatpush.msra.mxu1 %v1599_v22 }
 0x135   :  { %v719_v45 = vpop.f32.mrf.mxu1  ;;  %1220 = vmatpush.msra.mxu0 %v1556_v44 }
 0x136   :  { %v925_v39 = vadd.f32 %v924_v55, %v2552_v58  ;;  %v952_v21 = vrot.slane %v948_v1, 4  ;;  %v720_v7 = vadd.f32 %v719_v45, %v700_v10  ;;  %v1595_v55 = vunpack.c.l.bf16 %v1750_v27  ;;  %1236 = vmatpush.msra.mxu1 %v1596_v34  ;;  %v1749_v10 = vld [vmem:[#allocation4 + $0x48] sm:$0xff]  }
 0x137   :  { %1221 = vmatpush.msra.mxu0 %v1555_v14  ;;  %v1591_v33 = vunpack.c.l.bf16 %v1749_v10  ;;  %v1631_v34 = vunpack.c.l.bf16 %v1759_v6  ;;  %v1758_v14 = vld [vmem:[#allocation4 + $0x90] sm:$0xff]  }
 0x138   :  { %v926_v29 = vrot.slane %v925_v39, 2  ;;  %v953_v17 = vadd.f32 %v952_v21, %v948_v1  ;;  %v739_v59 = vpop.f32.mrf.mxu2  ;;  %v1763_v1 = vld [vmem:[#allocation4 + $0xb8] sm:$0xff]   ;;  %1237 = vmatpush.msra.mxu1 %v1595_v55 }
 0x139   :  { %v740_v60 = vadd.f32 %v739_v59, %v720_v7  ;;  %v759_v16 = vpop.f32.mrf.mxu3  ;;  %v1648_v45 = vunpack.c.h.bf16 %v1763_v1  ;;  %v1647_v7 = vunpack.c.l.bf16 %v1763_v1  ;;  %v1644_v59 = vunpack.c.h.bf16 %v1762_v28 }
 0x13a   :  { %v927_v40 = vadd.f32 %v926_v29, %v925_v39  ;;  %v954_v2 = vrot.slane %v953_v17, 2  ;;  %v1592_v39 = vunpack.c.h.bf16 %v1749_v10 }
 0x13b   :  { %v2558_v4 = vadd.f32 %v759_v16, %v740_v60  ;;  %1246 = vmatpush.msrb.mxu2 %v1648_v45  ;;  %v1588_v60 = vunpack.c.h.bf16 %v1748_v52  ;;  %v1627_v45 = vunpack.c.l.bf16 %v1758_v14 }
 0x13c   :  { %v928_v46 = vrot.slane %v927_v40, 1  ;;  %v955_v31 = vadd.f32 %v954_v2, %v953_v17  ;;  %v596_v17 = vperm.slane %v2548_v41, 2  ;;  %1238 = vmatpush.msra.mxu1 %v1592_v39  ;;  %v1643_v2 = vunpack.c.l.bf16 %v1762_v28 }
 0x13d   :  { %v930_v42 = vrot.slane %v2558_v4, 4  ;;  %v949_v62 = vmul.f32 %v2558_v4, %v2558_v4  ;;  %1247 = vmatpush.msrb.mxu2 %v1647_v7  ;;  %v1757_v7 = vld [vmem:[#allocation4 + $0x88] sm:$0xff]  }
 0x13e   :  { %v929_v0 = vadd.f32 %v928_v46, %v927_v40  ;;  %v956_v47 = vrot.slane %v955_v31, 1  ;;  %1239 = vmatpush.msra.mxu1 %v1591_v33 }
 0x13f   :  { %v931_v30 = vadd.f32 %v930_v42, %v2558_v4  ;;  %v958_v11 = vrot.slane %v949_v62, 4  ;;  %1248 = vmatpush.msrb.mxu2 %v1644_v59 }
 0x140   :  { %v957_v57 = vadd.f32 %v956_v47, %v955_v31  ;;  %v2564_v54 = vmul.f32 0.125, %v929_v0  ;;  %1240 = vmatpush.msra.mxu1 %v1588_v60  ;;  %v1640_v31 = vunpack.c.h.bf16 %v1761_v9  ;;  %v1639_v0 = vunpack.c.l.bf16 %v1761_v9  ;;  %v1760_v47 = vld [vmem:[#allocation4 + $0xa0] sm:$0xff]  }
 0x141   :  { %v932_v24 = vrot.slane %v931_v30, 2  ;;  %v959_v53 = vadd.f32 %v958_v11, %v949_v62  ;;  %1249 = vmatpush.msrb.mxu2 %v1643_v2  ;;  %v1635_v3 = vunpack.c.l.bf16 %v1760_v47 }
 0x142   :  { %v980_v43 = vmul.f32 0.125, %v957_v57  ;;  %v984_v61 = vmul.f32 %v2564_v54, %v2564_v54  ;;  %1241 = vmatpush.msra.mxu1 %v1587_v5  ;;  %v2585_v57 = vld [vmem:[%s2723_s5] sm:$0xf] }
 0x143   :  { %v933_v38 = vadd.f32 %v932_v24, %v931_v30  ;;  %v960_v19 = vrot.slane %v959_v53, 2  ;;  %1250 = vmatpush.msrb.mxu2 %v1640_v31  ;;  %v1636_v30 = vunpack.c.h.bf16 %v1760_v47  ;;  %v1045_v23 = vperm.slane %v2585_v57, 0  ;;  %v1756_v5 = vld [vmem:[#allocation4 + $0x80] sm:$0xff]  }
 0x144   :  { %v988_v25 = vsub.f32 %v980_v43, %v984_v61  ;;  %v1046_v59 = vperm.slane %v2585_v57, 1 }
 0x145   :  { %v934_v49 = vrot.slane %v933_v38, 1  ;;  %v961_v63 = vadd.f32 %v960_v19, %v959_v53  ;;  %1251 = vmatpush.msrb.mxu2 %v1639_v0  ;;  %v992_v19 = vsub.f32 %v2552_v58, %v2564_v54  ;;  %v1628_v58 = vunpack.c.h.bf16 %v1758_v14 }
 0x146   :  { %v2568_v26 = vadd.f32 1e-05, %v988_v25  ;;  %v779_v48 = vpop.f32.mrf.mxu0 }
 0x147   :  { %v935_v32 = vadd.f32 %v934_v49, %v933_v38  ;;  %v962_v37 = vrot.slane %v961_v63, 1  ;;  %v780_v46 = vadd.f32 %v779_v48, %v596_v17  ;;  %1252 = vmatpush.msrb.mxu2 %v1636_v30  ;;  %v1632_v38 = vunpack.c.h.bf16 %v1759_v6  ;;  %v1770_v30 = vld [vmem:[#allocation4 + $0xf0] sm:$0xff]   ;;  %v1769_v6 = vld [vmem:[#allocation4 + $0xe8] sm:$0xff]  }
 0x148   :  { %1797 = vrsqrt.f32 %v2568_v26  ;;  %vm1006_vm2 = vweird.f32 %v2568_v26 }
 0x149   :  { %v963_v21 = vadd.f32 %v962_v37, %v961_v63  ;;  %v2571_v50 = vmul.f32 0.125, %v935_v32  ;;  %1253 = vmatpush.msrb.mxu2 %v1635_v3  ;;  %v597_v3 = vperm.slane %v2548_v41, 3  ;;  %v1767_v41 = vld [vmem:[#allocation4 + $0xd8] sm:$0xff]  }
 0x14b   :  { %v981_v15 = vmul.f32 0.125, %v963_v21  ;;  %v985_v29 = vmul.f32 %v2571_v50, %v2571_v50  ;;  %1254 = vmatpush.msrb.mxu2 %v1632_v38  ;;  %v993_v52 = vsub.f32 %v2558_v4, %v2571_v50 }
 0x14d   :  { %v989_v40 = vsub.f32 %v981_v15, %v985_v29  ;;  %1255 = vmatpush.msrb.mxu2 %v1631_v34  ;;  %v1624_v15 = vunpack.c.h.bf16 %v1757_v7 }
 0x14e   :  { %v1798_v16 = vpop.eup %1797 }
 0x14f   :  { %v1001_v35 = vmul.f32 %v1798_v16, %v2568_v26  ;;  %v2577_v36 = vadd.f32 1e-05, %v989_v40  ;;  %vm1007_vm1 = vweird.f32 %v1798_v16  ;;  %v1058_v26 = vperm.slane %v2594_v20, 0  ;;  %1256 = vmatpush.msrb.mxu2 %v1628_v58 }
 0x150   :  { %v799_v13 = vpop.f32.mrf.mxu1  ;;  %vm1008_vm3 = vmor %vm1006_vm2, %vm1007_vm1  ;;  %v1623_v40 = vunpack.c.l.bf16 %v1757_v7 }
 0x151   :  { %v1002_v51 = vmul.f32 %v1798_v16, %v1001_v35  ;;  %1799 = vrsqrt.f32 %v2577_v36  ;;  %v800_v42 = vadd.f32 %v799_v13, %v780_v46  ;;  %vm1016_vm5 = vweird.f32 %v2577_v36  ;;  %1257 = vmatpush.msrb.mxu2 %v1627_v45  ;;  %v1771_v13 = vld [vmem:[#allocation4 + $0xf8] sm:$0xff]  }
 0x152   :  { %v819_v62 = vpop.f32.mrf.mxu2  ;;  %v1620_v46 = vunpack.c.h.bf16 %v1756_v5  ;;  %v1679_v47 = vunpack.c.l.bf16 %v1771_v13 }
 0x153   :  { %v1003_v8 = vmul.f32 0.5, %v1002_v51  ;;  %v820_v56 = vadd.f32 %v819_v62, %v800_v42  ;;  %v839_v11 = vpop.f32.mrf.mxu3  ;;  %1258 = vmatpush.msrb.mxu2 %v1624_v15  ;;  %v1619_v51 = vunpack.c.l.bf16 %v1756_v5  ;;  %v1680_v42 = vunpack.c.h.bf16 %v1771_v13 }
 0x155   :  { %v1004_v12 = vsub.f32 1.5, %v1003_v8  ;;  %v2580_v18 = vadd.f32 %v839_v11, %v820_v56  ;;  %1259 = vmatpush.msrb.mxu2 %v1623_v40  ;;  %1266 = vmatpush.msrb.mxu3 %v1680_v42  ;;  %v1676_v11 = vunpack.c.h.bf16 %v1770_v30 }
 0x157   :  { %v1800_v24 = vpop.eup %1799  ;;  %v1005_v53 = vmul.f32 %v1798_v16, %v1004_v12  ;;  %v936_v43 = vrot.slane %v2580_v18, 4  ;;  %v950_v61 = vmul.f32 %v2580_v18, %v2580_v18  ;;  %1260 = vmatpush.msrb.mxu2 %v1620_v46  ;;  %1267 = vmatpush.msrb.mxu3 %v1679_v47  ;;  %v1675_v12 = vunpack.c.l.bf16 %v1770_v30 }
 0x158   :  { %v1011_v22 = vmul.f32 %v1800_v24, %v2577_v36  ;;  %vm1017_vm4 = vweird.f32 %v1800_v24 }
 0x159   :  { %v1009_v27 = vsel %vm1008_vm3, %v1798_v16, %v1005_v53  ;;  %v937_v25 = vadd.f32 %v936_v43, %v2580_v18  ;;  %v964_v44 = vrot.slane %v950_v61, 4  ;;  %vm1018_vm6 = vmor %vm1016_vm5, %vm1017_vm4  ;;  %v1059_v16 = vperm.slane %v2594_v20, 1  ;;  %1261 = vmatpush.msrb.mxu2 %v1619_v51  ;;  %1268 = vmatpush.msrb.mxu3 %v1676_v11 }
 0x15a   :  { %v1040_v49 = vmul.f32 %v1009_v27, %v992_v19  ;;  %v1012_v63 = vmul.f32 %v1800_v24, %v1011_v22  ;;  %v1672_v53 = vunpack.c.h.bf16 %v1769_v6  ;;  %v1768_v22 = vld [vmem:[#allocation4 + $0xe0] sm:$0xff]   ;;  %vm1538_vm5 = vcmask 31744  }
 0x15b   :  { %v938_v55 = vrot.slane %v937_v25, 2  ;;  %v965_v1 = vadd.f32 %v964_v44, %v950_v61  ;;  %1269 = vmatpush.msrb.mxu3 %v1675_v12  ;;  %v1671_v61 = vunpack.c.l.bf16 %v1769_v6  ;;  %v1668_v27 = vunpack.c.h.bf16 %v1768_v22 }
 0x15c   :  { %v1013_v54 = vmul.f32 0.5, %v1012_v63  ;;  %v1053_v32 = vmul.f32 %v1045_v23, %v1040_v49  ;;  %v1667_v49 = vunpack.c.l.bf16 %v1768_v22 }
 0x15d   :  { %v939_v37 = vadd.f32 %v938_v55, %v937_v25  ;;  %v966_v10 = vrot.slane %v965_v1, 2  ;;  %1270 = vmatpush.msrb.mxu3 %v1672_v53  ;;  %v1664_v55 = vunpack.c.h.bf16 %v1767_v41 }
 0x15e   :  { %v1014_v39 = vsub.f32 1.5, %v1013_v54  ;;  %v1066_v21 = vadd.f32 %v1058_v26, %v1053_v32  ;;  %v1663_v54 = vunpack.c.l.bf16 %v1767_v41 }
 0x15f   :  { %v940_v33 = vrot.slane %v939_v37, 1  ;;  %v967_v28 = vadd.f32 %v966_v10, %v965_v1  ;;  %1271 = vmatpush.msrb.mxu3 %v1671_v61  ;;  %v1766_v10 = vld [vmem:[#allocation4 + $0xd0] sm:$0xff]  }
 0x160   :  { %v1015_v29 = vmul.f32 %v1800_v24, %v1014_v39  ;;  %v1070_v17 = vmax.f32 %v1066_v21, 0.0  ;;  %v1660_v39 = vunpack.c.h.bf16 %v1766_v10 }
 0x161   :  { %v941_v48 = vadd.f32 %v940_v33, %v939_v37  ;;  %v968_v60 = vrot.slane %v967_v28, 1  ;;  %1272 = vmatpush.msrb.mxu3 %v1668_v27 }
 0x162   :  { %v1019_v2 = vsel %vm1018_vm6, %v1800_v24, %v1015_v29  ;;  %1222 = vmatmul.f32.vlgmr.msra.gmra.mxu0 %v1070_v17  ;;  %v1659_v29 = vunpack.c.l.bf16 %v1766_v10 }
 0x163   :  { %v1041_v9 = vmul.f32 %v1019_v2, %v993_v52  ;;  %v969_v35 = vadd.f32 %v968_v60, %v967_v28  ;;  %v2607_v36 = vmul.f32 0.125, %v941_v48  ;;  %1273 = vmatpush.msrb.mxu3 %v1667_v49  ;;  %v1047_v28 = vperm.slane %v2585_v57, 2  ;;  %v1765_v60 = vld [vmem:[#allocation4 + $0xc8] sm:$0xff]  }
 0x164   :  { %v1060_v48 = vperm.slane %v2594_v20, 2  ;;  %v1656_v40 = vunpack.c.h.bf16 %v1765_v60  ;;  %v1655_v5 = vunpack.c.l.bf16 %v1765_v60 }
 0x165   :  { %v982_v31 = vmul.f32 0.125, %v969_v35  ;;  %v986_v4 = vmul.f32 %v2607_v36, %v2607_v36  ;;  %v1054_v50 = vmul.f32 %v1046_v59, %v1041_v9  ;;  %1274 = vmatpush.msrb.mxu3 %v1664_v55  ;;  %v994_v21 = vsub.f32 %v2580_v18, %v2607_v36  ;;  %v1764_v9 = vld [vmem:[#allocation4 + $0xc0] sm:$0xff]  }
 0x166   :  { %v1652_v35 = vunpack.c.h.bf16 %v1764_v9 }
 0x167   :  { %v990_v62 = vsub.f32 %v982_v31, %v986_v4  ;;  %v1067_v0 = vadd.f32 %v1059_v16, %v1054_v50  ;;  %1275 = vmatpush.msrb.mxu3 %v1663_v54  ;;  %v1651_v4 = vunpack.c.l.bf16 %v1764_v9 }
 0x168   :  { %v859_v24 = vpop.f32.mrf.mxu0 }
 0x169   :  { %v998_v8 = vadd.f32 1e-05, %v990_v62  ;;  %v1071_v56 = vmax.f32 %v1067_v0, 0.0  ;;  %v860_v19 = vadd.f32 %v859_v24, %v597_v3  ;;  %1276 = vmatpush.msrb.mxu3 %v1660_v39 }
 0x16b   :  { %1801 = vrsqrt.f32 %v998_v8  ;;  %1242 = vmatmul.f32.vlgmr.msra.gmra.mxu1 %v1071_v56  ;;  %vm1026_vm8 = vweird.f32 %v998_v8  ;;  %1277 = vmatpush.msrb.mxu3 %v1659_v29  ;;  %v1789_v29 = vld [vmem:[%s2726_s8] ss:$0 sm:$0xff] }
 0x16d   :  { %1278 = vmatpush.msrb.mxu3 %v1656_v40 }
 0x16f   :  { %1279 = vmatpush.msrb.mxu3 %v1655_v5  ;;  %v2655_v5 = vld [vmem:[%s2777_s4] sm:$0xff] }
 0x170   :  { %v879_v43 = vpop.f32.mrf.mxu1  ;;  %v1396_v9 = vmul.f32 %v2655_v5, %v2655_v5 }
 0x171   :  { %v1802_v38 = vpop.eup %1801  ;;  %v880_v25 = vadd.f32 %v879_v43, %v860_v19  ;;  %1280 = vmatpush.msrb.mxu3 %v1652_v35  ;;  %v1048_v43 = vperm.slane %v2585_v57, 3  ;;  %v1061_v19 = vperm.slane %v2594_v20, 3  ;;  %v1776_v20 = vld [vmem:[%s2727_s9 + $0x28] sm:$0xff]  }
 0x172   :  { %v1021_v23 = vmul.f32 %v1802_v38, %v998_v8  ;;  %vm1027_vm7 = vweird.f32 %v1802_v38  ;;  %v1704_v41 = vunpack.c.h.bf16 %v1776_v20  ;;  %v1397_v35 = vsel %vm120_vm0, %v1396_v9, 0.0 }
 0x173   :  { %vm1028_vm9 = vmor %vm1026_vm8, %vm1027_vm7  ;;  %1281 = vmatpush.msrb.mxu3 %v1651_v4 }
 0x174   :  { %v1022_v44 = vmul.f32 %v1802_v38, %v1021_v23  ;;  %v899_v34 = vpop.f32.mrf.mxu2  ;;  %v919_v14 = vpop.f32.mrf.mxu3 }
 0x175   :  { %v900_v63 = vadd.f32 %v899_v34, %v880_v25  ;;  %v1778_v25 = vld [vmem:[%s2727_s9 + $0x38] sm:$0xff]  }
 0x176   :  { %v1023_v26 = vmul.f32 0.5, %v1022_v44  ;;  %v1777_v44 = vld [vmem:[%s2727_s9 + $0x30] sm:$0xff]   ;;  %v1712_v34 = vunpack.c.h.bf16 %v1778_v25  ;;  %v1711_v49 = vunpack.c.l.bf16 %v1778_v25 }
 0x177   :  { %v2612_v1 = vadd.f32 %v919_v14, %v900_v63  ;;  %v1708_v57 = vunpack.c.h.bf16 %v1777_v44  ;;  %v1707_v63 = vunpack.c.l.bf16 %v1777_v44  ;;  %v1703_v14 = vunpack.c.l.bf16 %v1776_v20 }
 0x178   :  { %v1024_v58 = vsub.f32 1.5, %v1023_v26  ;;  %1323 = vmatpush.msrb.mxu0 %v1712_v34  ;;  %v1775_v26 = vld [vmem:[%s2727_s9 + $0x20] sm:$0xff]  }
 0x179   :  { %v942_v32 = vrot.slane %v2612_v1, 4  ;;  %v951_v37 = vmul.f32 %v2612_v1, %v2612_v1  ;;  %v1700_v55 = vunpack.c.h.bf16 %v1775_v26 }
 0x17a   :  { %v1025_v45 = vmul.f32 %v1802_v38, %v1024_v58  ;;  %1324 = vmatpush.msrb.mxu0 %v1711_v49  ;;  %v1699_v58 = vunpack.c.l.bf16 %v1775_v26 }
 0x17b   :  { %v943_v7 = vadd.f32 %v942_v32, %v2612_v1  ;;  %v970_v33 = vrot.slane %v951_v37, 4  ;;  %v1773_v32 = vld [vmem:[%s2727_s9 + $0x10] sm:$0xff]  }
 0x17c   :  { %v1029_v15 = vsel %vm1028_vm9, %v1802_v38, %v1025_v45  ;;  %1325 = vmatpush.msrb.mxu0 %v1708_v57  ;;  %v1692_v10 = vunpack.c.h.bf16 %v1773_v32  ;;  %v1772_v45 = vld [vmem:[%s2727_s9 + $0x8] sm:$0xff]   ;;  %v1691_v39 = vunpack.c.l.bf16 %v1773_v32 }
 0x17d   :  { %v1042_v17 = vmul.f32 %v1029_v15, %v994_v21  ;;  %v944_v59 = vrot.slane %v943_v7, 2  ;;  %v971_v52 = vadd.f32 %v970_v33, %v951_v37  ;;  %v1688_v21 = vunpack.c.h.bf16 %v1772_v45  ;;  %v1682_v33 = vld [vmem:[%s2727_s9] sm:$0xff]  }
 0x17e   :  { %1326 = vmatpush.msrb.mxu0 %v1707_v63  ;;  %v1683_v15 = vunpack.c.l.bf16 %v1682_v33 }
 0x17f   :  { %v945_v2 = vadd.f32 %v944_v59, %v943_v7  ;;  %v972_v16 = vrot.slane %v971_v52, 2  ;;  %v1055_v18 = vmul.f32 %v1047_v28, %v1042_v17  ;;  %v1687_v7 = vunpack.c.l.bf16 %v1772_v45 }
 0x180   :  { %1327 = vmatpush.msrb.mxu0 %v1704_v41  ;;  %v1684_v28 = vunpack.c.h.bf16 %v1682_v33 }
 0x181   :  { %v946_v36 = vrot.slane %v945_v2, 1  ;;  %v973_v46 = vadd.f32 %v972_v16, %v971_v52  ;;  %v1068_v31 = vadd.f32 %v1060_v48, %v1055_v18 }
 0x182   :  { %1328 = vmatpush.msrb.mxu0 %v1703_v14  ;;  %v1779_v14 = vld [vmem:[%s2733_s15 + $0x8] sm:$0xff]  }
 0x183   :  { %v947_v50 = vadd.f32 %v946_v36, %v945_v2  ;;  %v974_v13 = vrot.slane %v973_v46, 1  ;;  %v1072_v51 = vmax.f32 %v1068_v31, 0.0  ;;  %v1398_v36 = vrot.slane %v1397_v35, 4 }
 0x184   :  { %1329 = vmatpush.msrb.mxu0 %v1700_v55  ;;  %v1720_v55 = vunpack.c.h.bf16 %v1779_v14  ;;  %v1719_v32 = vunpack.c.l.bf16 %v1779_v14 }
 0x185   :  { %v975_v42 = vadd.f32 %v974_v13, %v973_v46  ;;  %v979_v62 = vmul.f32 0.125, %v947_v50  ;;  %1262 = vmatmul.f32.vlgmr.msrb.gmra.mxu2 %v1072_v51  ;;  %v1389_v46 = vsel %vm120_vm0, %v2655_v5, 0.0  ;;  %v1399_v4 = vadd.f32 %v1398_v36, %v1397_v35  ;;  %v1793_v35 = vld [vmem:[%s2731_s13] ss:$0 sm:$0xff] }
 0x186   :  { %1330 = vmatpush.msrb.mxu0 %v1699_v58  ;;  %v1390_v31 = vrot.slane %v1389_v46, 4  ;;  %v1794_v36 = vld [vmem:[%s2732_s14] ss:$0 sm:$0xff] }
 0x187   :  { %v983_v0 = vmul.f32 0.125, %v975_v42  ;;  %v987_v47 = vmul.f32 %v979_v62, %v979_v62  ;;  %v995_v53 = vsub.f32 %v2612_v1, %v979_v62  ;;  %v1774_v1 = vld [vmem:[%s2727_s9 + $0x18] sm:$0xff]   ;;  %v1400_v50 = vrot.slane %v1399_v4, 2 }
 0x188   :  { %v1696_v54 = vunpack.c.h.bf16 %v1774_v1  ;;  %v1695_v37 = vunpack.c.l.bf16 %v1774_v1  ;;  %v1391_v13 = vadd.f32 %v1390_v31, %v1389_v46 }
 0x189   :  { %v991_v8 = vsub.f32 %v983_v0, %v987_v47  ;;  %v1401_v42 = vadd.f32 %v1400_v50, %v1399_v4 }
 0x18a   :  { %1331 = vmatpush.msrb.mxu0 %v1696_v54  ;;  %v1392_v51 = vrot.slane %v1391_v13, 2 }
 0x18b   :  { %v999_v56 = vadd.f32 1e-05, %v991_v8  ;;  %v1402_v8 = vrot.slane %v1401_v42, 1 }
 0x18c   :  { %1332 = vmatpush.msrb.mxu0 %v1695_v37  ;;  %v1393_v62 = vadd.f32 %v1392_v51, %v1391_v13 }
 0x18d   :  { %1803 = vrsqrt.f32 %v999_v56  ;;  %vm1036_vm11 = vweird.f32 %v999_v56 }
 0x18e   :  { %1333 = vmatpush.msrb.mxu0 %v1692_v10  ;;  %v1394_v0 = vrot.slane %v1393_v62, 1 }
 0x190   :  { %1334 = vmatpush.msrb.mxu0 %v1691_v39  ;;  %v1395_v47 = vadd.f32 %v1394_v0, %v1393_v62  ;;  %v1714_v39 = vld [vmem:[%s2733_s15] sm:$0xff]  }
 0x192   :  { %1335 = vmatpush.msrb.mxu0 %v1688_v21  ;;  %v1716_v21 = vunpack.c.h.bf16 %v1714_v39 }
 0x193   :  { %v1804_v30 = vpop.eup %1803 }
 0x194   :  { %v1031_v11 = vmul.f32 %v1804_v30, %v999_v56  ;;  %vm1037_vm10 = vweird.f32 %v1804_v30  ;;  %1336 = vmatpush.msrb.mxu0 %v1687_v7  ;;  %v1403_v56 = vadd.f32 %v1402_v8, %v1401_v42 }
 0x195   :  { %vm1038_vm12 = vmor %vm1036_vm11, %vm1037_vm10 }
 0x196   :  { %v1032_v12 = vmul.f32 %v1804_v30, %v1031_v11  ;;  %1337 = vmatpush.msrb.mxu0 %v1684_v28  ;;  %v1405_v11 = vmul.f32 0.125, %v1403_v56 }
 0x198   :  { %v1033_v3 = vmul.f32 0.5, %v1032_v12  ;;  %1338 = vmatpush.msrb.mxu0 %v1683_v15  ;;  %v1715_v15 = vunpack.c.l.bf16 %v1714_v39 }
 0x19a   :  { %v1034_v6 = vsub.f32 1.5, %v1033_v3 }
 0x19c   :  { %v1035_v24 = vmul.f32 %v1804_v30, %v1034_v6  ;;  %v1790_v6 = vld [vmem:[%s2728_s10] ss:$0 sm:$0xff] }
 0x19e   :  { %v1039_v61 = vsel %vm1038_vm12, %v1804_v30, %v1035_v24  ;;  %v1404_v30 = vmul.f32 0.125, %v1395_v47 }
 0x19f   :  { %v1043_v38 = vmul.f32 %v1039_v61, %v995_v53 }
 0x1a0   :  { %v1406_v12 = vmul.f32 %v1404_v30, %v1404_v30 }
 0x1a1   :  { %v1056_v22 = vmul.f32 %v1048_v43, %v1043_v38  ;;  %v1781_v43 = vld [vmem:[%s2733_s15 + $0x18] sm:$0xff]  }
 0x1a2   :  { %v1407_v3 = vsub.f32 %v1405_v11, %v1406_v12  ;;  %v1728_v38 = vunpack.c.h.bf16 %v1781_v43  ;;  %v1791_v12 = vld [vmem:[%s2729_s11] ss:$0 sm:$0xff] }
 0x1a3   :  { %v1069_v23 = vadd.f32 %v1061_v19, %v1056_v22  ;;  %v1727_v22 = vunpack.c.l.bf16 %v1781_v43 }
 0x1a4   :  { %v1409_v24 = vadd.f32 1e-05, %v1407_v3  ;;  %1483 = vmatpush.msra.mxu2 %v1728_v38  ;;  %v1734_v38 = vld [vmem:[%s2736_s18] sm:$0xff]  }
 0x1a5   :  { %v1073_v27 = vmax.f32 %v1069_v23, 0.0  ;;  %v1780_v23 = vld [vmem:[%s2733_s15 + $0x10] sm:$0xff]  }
 0x1a6   :  { %1805 = vrsqrt.f32 %v1409_v24  ;;  %1484 = vmatpush.msra.mxu2 %v1727_v22  ;;  %v1724_v44 = vunpack.c.h.bf16 %v1780_v23  ;;  %v1723_v20 = vunpack.c.l.bf16 %v1780_v23  ;;  %vm1416_vm14 = vweird.f32 %v1409_v24 }
 0x1a7   :  { %1282 = vmatmul.f32.vlgmr.msrb.gmra.mxu3 %v1073_v27  ;;  %v1735_v22 = vunpack.c.l.bf16 %v1734_v38 }
 0x1a8   :  { %1485 = vmatpush.msra.mxu2 %v1724_v44 }
 0x1aa   :  { %1486 = vmatpush.msra.mxu2 %v1723_v20 }
 0x1ac   :  { %v1806_v34 = vpop.eup %1805  ;;  %1487 = vmatpush.msra.mxu2 %v1720_v55 }
 0x1ad   :  { %v1411_v63 = vmul.f32 %v1806_v34, %v1409_v24  ;;  %vm1417_vm15 = vweird.f32 %v1806_v34  ;;  %v1792_v24 = vld [vmem:[%s2730_s12] ss:$0 sm:$0xff] }
 0x1ae   :  { %1488 = vmatpush.msra.mxu2 %v1719_v32  ;;  %vm1418_vm1 = vmor %vm1416_vm14, %vm1417_vm15 }
 0x1af   :  { %v1412_v1 = vmul.f32 %v1806_v34, %v1411_v63 }
 0x1b0   :  { %1489 = vmatpush.msra.mxu2 %v1716_v21 }
 0x1b1   :  { %v1413_v37 = vmul.f32 0.5, %v1412_v1 }
 0x1b2   :  { %1490 = vmatpush.msra.mxu2 %v1715_v15 }
 0x1b3   :  { %v1414_v7 = vsub.f32 1.5, %v1413_v37 }
 0x1df   :  { %v1223_v17 = vpop.f32.mrf.mxu0 }
 0x1e0   :  { %v1224_v52 = vadd.f32 %v1789_v29, %v1223_v17  ;;  %v1415_v29 = vmul.f32 %v1806_v34, %v1414_v7 }
 0x1e8   :  { %v1243_v59 = vpop.f32.mrf.mxu1 }
 0x1e9   :  { %v1244_v60 = vadd.f32 %v1243_v59, %v1224_v52  ;;  %v1730_v52 = vld [vmem:[%s2734_s16] sm:$0xff]  }
 0x208   :  { %v1263_v48 = vpop.f32.mrf.mxu2 }
 0x209   :  { %v1264_v40 = vadd.f32 %v1263_v48, %v1244_v60  ;;  %v1408_v48 = vsub.f32 %v2655_v5, %v1404_v30  ;;  %v1732_v60 = vunpack.c.h.bf16 %v1730_v52  ;;  %v1782_v5 = vld [vmem:[%s2736_s18 + $0x8] sm:$0xff]  }
 0x20a   :  { %v1740_v46 = vunpack.c.h.bf16 %v1782_v5 }
 0x20b   :  { %1466 = vmatpush.msrb.mxu1 %v1732_v60 }
 0x20c   :  { %1529 = vmatpush.msra.mxu3 %v1740_v46 }
 0x22a   :  { %v1283_v2 = vpop.f32.mrf.mxu3 }
 0x22b   :  { %v1284_v16 = vadd.f32 %v1283_v2, %v1264_v40  ;;  %v1419_v40 = vsel %vm1418_vm1, %v1806_v34, %v1415_v29 }
 0x22c   :  { %v1420_v9 = vmul.f32 %v1419_v40, %v1408_v48 }
 0x22d   :  { %v1286_v18 = vmax.f32 %v1284_v16, 0.0 }
 0x22e   :  { %v1424_v50 = vmul.f32 %v1793_v35, %v1420_v9 }
 0x22f   :  { %1339 = vmatmul.f32.vlgmr.msrb.gmra.mxu0 %v1286_v18  ;;  %v1731_v18 = vunpack.c.l.bf16 %v1730_v52 }
 0x230   :  { %v1428_v51 = vadd.f32 %v1794_v36, %v1424_v50 }
 0x231   :  { %1467 = vmatpush.msrb.mxu1 %v1731_v18 }
 0x232   :  { %1550 = vmatmul.msk.f32.vlgmr.msrb.gmra.mxu1 %vm120_vm0, %v1428_v51  ;;  %vm1513_vm0 = vcmask 261120  }
 0x2ac   :  { %v1340_v53 = vpop.f32.mrf.mxu0 }
 0x2ad   :  { %v1341_v61 = vadd.f32 %v1790_v6, %v1340_v53 }
 0x2af   :  { %v2668_v19 = vmax.f32 %v1341_v61, 0.0  ;;  %v1739_v61 = vunpack.c.l.bf16 %v1782_v5  ;;  %v1469_v23 = vpop.f32.mrf.mxu1 }
 0x2b1   :  { %v1347_v27 = vsel %vm1346_vm13, %v2668_v19, 0.0  ;;  %v1354_v25 = vmul.f32 %v2668_v19, %v2668_v19  ;;  %1530 = vmatpush.msra.mxu3 %v1739_v61 }
 0x2b2   :  { %v1348_v49 = vrot.slane %v1347_v27, 4 }
 0x2b3   :  { %v1355_v57 = vsel %vm1346_vm13, %v1354_v25, 0.0 }
 0x2b4   :  { %v1349_v41 = vadd.f32 %v1348_v49, %v1347_v27  ;;  %v1356_v26 = vrot.slane %v1355_v57, 4  ;;  %v1795_v27 = vld [vmem:[%s2735_s17] ss:$0 sm:$0xff] }
 0x2b6   :  { %v1350_v58 = vrot.slane %v1349_v41, 2  ;;  %v1357_v54 = vadd.f32 %v1356_v26, %v1355_v57  ;;  %v1796_v57 = vld [vmem:[%s2737_s19] ss:$0 sm:$0xff] }
 0x2b8   :  { %v1351_v10 = vadd.f32 %v1350_v58, %v1349_v41  ;;  %v1358_v45 = vrot.slane %v1357_v54, 2 }
 0x2ba   :  { %v1352_v33 = vrot.slane %v1351_v10, 1  ;;  %v1359_v28 = vadd.f32 %v1358_v45, %v1357_v54 }
 0x2bc   :  { %v1353_v17 = vadd.f32 %v1352_v33, %v1351_v10  ;;  %v1360_v59 = vrot.slane %v1359_v28, 1 }
 0x2be   :  { %v1361_v2 = vadd.f32 %v1360_v59, %v1359_v28  ;;  %v1362_v16 = vmul.f32 0.125, %v1353_v17 }
 0x2c0   :  { %v1363_v31 = vmul.f32 0.125, %v1361_v2  ;;  %v1364_v4 = vmul.f32 %v1362_v16, %v1362_v16  ;;  %v1366_v11 = vsub.f32 %v2668_v19, %v1362_v16  ;;  %v1736_v19 = vunpack.c.h.bf16 %v1734_v38 }
 0x2c2   :  { %v1365_v13 = vsub.f32 %v1363_v31, %v1364_v4  ;;  %1531 = vmatpush.msra.mxu3 %v1736_v19 }
 0x2c4   :  { %v1367_v42 = vadd.f32 1e-05, %v1365_v13  ;;  %1532 = vmatpush.msra.mxu3 %v1735_v22 }
 0x2c6   :  { %1807 = vrsqrt.f32 %v1367_v42  ;;  %vm1374_vm3 = vweird.f32 %v1367_v42 }
 0x2cc   :  { %v1808_v62 = vpop.eup %1807 }
 0x2cd   :  { %v1369_v0 = vmul.f32 %v1808_v62, %v1367_v42  ;;  %vm1375_vm2 = vweird.f32 %v1808_v62 }
 0x2ce   :  { %vm1376_vm4 = vmor %vm1374_vm3, %vm1375_vm2 }
 0x2cf   :  { %v1370_v47 = vmul.f32 %v1808_v62, %v1369_v0 }
 0x2d1   :  { %v1371_v8 = vmul.f32 0.5, %v1370_v47 }
 0x2d3   :  { %v1372_v56 = vsub.f32 1.5, %v1371_v8 }
 0x2d5   :  { %v1373_v30 = vmul.f32 %v1808_v62, %v1372_v56 }
 0x2d7   :  { %v1377_v3 = vsel %vm1376_vm4, %v1808_v62, %v1373_v30 }
 0x2d8   :  { %v1378_v6 = vmul.f32 %v1377_v3, %v1366_v11 }
 0x2da   :  { %v1382_v53 = vmul.f32 %v1791_v12, %v1378_v6 }
 0x2dc   :  { %v1386_v43 = vadd.f32 %v1792_v24, %v1382_v53 }
 0x2de   :  { %1551 = vmatmul.msk.f32.vlgmr.msra.gmra.mxu2 %vm1346_vm13, %v1386_v43 }
 0x361   :  { %v1492_v25 = vpop.f32.mrf.mxu2 }
 0x362   :  { %v1493_v44 = vadd.f32 %v1492_v25, %v1469_v23 }
 0x364   :  { %v1499_v34 = vadd.f32 %v1795_v27, %v1493_v44 }
 0x366   :  { %v1500_v49 = vmax.f32 %v1499_v34, 0.0 }
 0x368   :  { %1552 = vmatmul.msk.f32.vlgmr.msra.gmra.mxu3 %vm1513_vm0, %v1500_v49 }
 0x3eb   :  { %v1534_v20 = vpop.f32.mrf.mxu3 }
 0x3ec   :  { %v1535_v63 = vadd.f32 %v1796_v57, %v1534_v20 }
 0x3ee   :  { %1809 = vtanh.f32 %v1535_v63 }
 0x3f4   :  { %v1810_v41 = vpop.eup %1809 }
 0x3f5   :  { %1539 = vst.msk [vmem:[%s2738_s20] sm:$0xff] %vm1538_vm5, %v1810_v41 }
 0x3f6   :  { %1544 = vsyncpa [#allocation3], 1 }
 0x3f7   :  { %1545 = vsyncpa [#allocation5], 1 }

</bundles_post_ra>
